<compile_context>
chip_gen: v7x
topology: tpu7x:2x2x1
jax: 0.10.0
libtpu: 0.0.40
codegen_flags: <defaults>
</compile_context>

<pallas_src>
import functools

import jax
import jax.numpy as jnp
from jax import lax
from jax.experimental import pallas as pl
from jax.experimental.pallas import tpu as pltpu
import numpy as np


def lstm_tagger_kernel(x_ref, wih_t_ref, whh_t_ref, b_ref, out_ref, xw_ref,
                       *, hidden_dim):
    """Full forward pass for one sequence.

    x_ref:     (S, D)       float32
    wih_t_ref: (D, 4*HP)    float32   (W_ih^T, gate-padded to HP lanes per gate)
    whh_t_ref: (HP, 4*HP)   float32   (W_hh^T, row- and gate-padded)
    b_ref:     (1, 4*HP)    float32   (b_ih + b_hh, gate-padded)
    out_ref:   (S, HP)      float32   log_softmax over the first `hidden_dim` lanes
    xw_ref:    (S, 4*HP)    VMEM scratch: precomputed input projections
    """
    S = x_ref.shape[0]
    HP = whh_t_ref.shape[0]  # padded, lane-aligned hidden width (128)

    # Whole-sequence input projection in one MXU matmul (bias folded in once).
    xw_ref[...] = (
        jnp.dot(x_ref[...], wih_t_ref[...], preferred_element_type=jnp.float32)
        + b_ref[...]
    )

    def step(t, carry):
        h, c = carry  # (1, HP) each, lane-dense
        gates = xw_ref[pl.ds(t, 1), :] + jnp.dot(
            h, whh_t_ref[...], preferred_element_type=jnp.float32
        )  # (1, 4*HP)

        # Fused activations: one sigmoid pass + one tanh pass over the full
        # gate vreg, then lane-aligned 128-wide selects (no cross-lane moves).
        sig_all = jax.nn.sigmoid(gates)
        tanh_all = jnp.tanh(gates)
        i_g = sig_all[:, 0 * HP:1 * HP]
        f_g = sig_all[:, 1 * HP:2 * HP]
        g_g = tanh_all[:, 2 * HP:3 * HP]
        o_g = sig_all[:, 3 * HP:4 * HP]

        c_new = f_g * c + i_g * g_g
        h_new = o_g * jnp.tanh(c_new)
        # Padded lanes: zero weights/bias => gates=0 => h_new,c_new stay 0 there.
        out_ref[pl.ds(t, 1), :] = h_new
        return (h_new, c_new)

    h0 = jnp.zeros((1, HP), jnp.float32)
    c0 = jnp.zeros((1, HP), jnp.float32)
    # S is a compile-time constant: fully unroll the latency-bound recurrence.
    lax.fori_loop(0, S, step, (h0, c0), unroll=True)

    # log_softmax over the *real* hidden lanes only (padded lanes masked out).
    h_all = out_ref[...]                                     # (S, HP)
    col = lax.broadcasted_iota(jnp.int32, h_all.shape, 1)
    valid = col < hidden_dim
    m = jnp.max(jnp.where(valid, h_all, -jnp.inf), axis=1, keepdims=True)
    s = jnp.sum(jnp.where(valid, jnp.exp(h_all - m), 0.0), axis=1, keepdims=True)
    lse = jnp.log(s) + m
    out_ref[...] = h_all - lse  # padded lanes hold junk; wrapper slices them off


def _pad_gate_cols(w_t, H, HP):
    """(K, 4H) -> (K, 4*HP): zero-pad each of the 4 gate blocks to HP lanes."""
    K = w_t.shape[0]
    return jnp.pad(
        w_t.reshape(K, 4, H), ((0, 0), (0, 0), (0, HP - H))
    ).reshape(K, 4 * HP)


def lstm_tagger_forward(x, w_ih, w_hh, b_ih, b_hh):
    """x: (S, D) float32.  Returns (S, H) float32 log-probabilities."""
    S, D = x.shape
    H4, _ = w_ih.shape
    H = H4 // 4
    HP = pl.cdiv(H, 128) * 128  # lane-aligned padded hidden width

    x32 = jnp.asarray(x, jnp.float32)
    wih_t_p = _pad_gate_cols(jnp.asarray(w_ih.T, jnp.float32), H, HP)          # (D, 4*HP)
    whh_t_p = _pad_gate_cols(jnp.asarray(w_hh.T, jnp.float32), H, HP)          # (H, 4*HP)
    whh_t_p = jnp.pad(whh_t_p, ((0, HP - H), (0, 0)))                          # (HP, 4*HP)
    b_p = _pad_gate_cols(jnp.asarray((b_ih + b_hh).reshape(1, H4), jnp.float32), H, HP)

    kernel = functools.partial(lstm_tagger_kernel, hidden_dim=H)

    out_padded = pl.pallas_call(
        kernel,
        out_shape=jax.ShapeDtypeStruct((S, HP), jnp.float32),
        in_specs=[
            pl.BlockSpec((S, D), lambda: (0, 0)),
            pl.BlockSpec((D, 4 * HP), lambda: (0, 0)),
            pl.BlockSpec((HP, 4 * HP), lambda: (0, 0)),
            pl.BlockSpec((1, 4 * HP), lambda: (0, 0)),
        ],
        out_specs=pl.BlockSpec((S, HP), lambda: (0, 0)),
        scratch_shapes=[
            pltpu.VMEM((S, 4 * HP), jnp.float32),
        ],
        cost_estimate=pl.CostEstimate(
            flops=2 * S * D * 4 * HP + 2 * S * HP * 4 * HP,
            transcendentals=9 * S * HP,
            bytes_accessed=4 * (S * D + D * 4 * HP + HP * 4 * HP + 4 * HP + S * HP),
        ),
    )(x32, wih_t_p, whh_t_p, b_p)

    return out_padded[:, :H]


def lstm_tagger_reference(x, w_ih, w_hh, b_ih, b_hh):
    """Pure-JAX reference matching PyTorch nn.LSTM gate semantics."""
    S, D = x.shape
    H = w_hh.shape[1]
    h = jnp.zeros((H,), jnp.float32)
    c = jnp.zeros((H,), jnp.float32)
    outs = []
    for t in range(S):
        gates = x[t] @ w_ih.T + b_ih + h @ w_hh.T + b_hh
        i_g = jax.nn.sigmoid(gates[0 * H:1 * H])
        f_g = jax.nn.sigmoid(gates[1 * H:2 * H])
        g_g = jnp.tanh(gates[2 * H:3 * H])
        o_g = jax.nn.sigmoid(gates[3 * H:4 * H])
        c = f_g * c + i_g * g_g
        h = o_g * jnp.tanh(c)
        outs.append(h)
    lstm_out = jnp.stack(outs, axis=0)  # (S, H)
    return jax.nn.log_softmax(lstm_out, axis=1)


if __name__ == "__main__":
    # Small shapes consistent with the module: seq=8, input_dim=16, hidden=32.
    SEQ, INPUT_DIM, HIDDEN_DIM = 8, 16, 32
    VOCAB_SIZE, TAGSET_SIZE = 100, 8  # unused by forward, kept for fidelity

    key = jax.random.PRNGKey(0)
    kx, k1, k2, k3, k4, k5 = jax.random.split(key, 6)

    bound = 1.0 / np.sqrt(HIDDEN_DIM)  # PyTorch LSTM default init range
    x = jax.random.normal(kx, (SEQ, INPUT_DIM), jnp.float32)
    w_ih = jax.random.uniform(k1, (4 * HIDDEN_DIM, INPUT_DIM), jnp.float32, -bound, bound)
    w_hh = jax.random.uniform(k2, (4 * HIDDEN_DIM, HIDDEN_DIM), jnp.float32, -bound, bound)
    b_ih = jax.random.uniform(k3, (4 * HIDDEN_DIM,), jnp.float32, -bound, bound)
    b_hh = jax.random.uniform(k4, (4 * HIDDEN_DIM,), jnp.float32, -bound, bound)
    # hidden2tag params (unused in the reference forward), init for completeness:
    _w_tag = jax.random.uniform(k5, (TAGSET_SIZE, HIDDEN_DIM), jnp.float32, -bound, bound)

    out = lstm_tagger_forward(x, w_ih, w_hh, b_ih, b_hh)
    out = jax.block_until_ready(out)

    ref = lstm_tagger_reference(x, w_ih, w_hh, b_ih, b_hh)
    np.testing.assert_allclose(np.asarray(out), np.asarray(ref), rtol=1e-5, atol=1e-5)

    print("KERNEL_OK")
</pallas_src>

<mosaic_0001>
module attributes {stable_mosaic.version = 11 : i64} {
  func.func @lstm_tagger_kernel(%arg0: memref<8x16xf32, #tpu.memory_space<vmem>>, %arg1: memref<16x512xf32, #tpu.memory_space<vmem>>, %arg2: memref<128x512xf32, #tpu.memory_space<vmem>>, %arg3: memref<1x512xf32, #tpu.memory_space<vmem>>, %arg4: memref<8x128xf32, #tpu.memory_space<vmem>>, %arg5: memref<8x512xf32, #tpu.memory_space<vmem>>) attributes {dimension_semantics = [], scalar_prefetch = 0 : i64, scratch_operands = 1 : i64, tpu.core_type = #tpu.core_type<tc>} {
    %c0 = arith.constant 0 : index
    %c0_0 = arith.constant 0 : index
    %0 = vector.load %arg0[%c0, %c0_0] : memref<8x16xf32, #tpu.memory_space<vmem>>, vector<8x16xf32>
    %c0_1 = arith.constant 0 : index
    %c0_2 = arith.constant 0 : index
    %1 = vector.load %arg1[%c0_1, %c0_2] : memref<16x512xf32, #tpu.memory_space<vmem>>, vector<16x512xf32>
    %cst = arith.constant dense<0.000000e+00> : vector<8x512xf32>
    %2 = tpu.matmul %0, %1, %cst {dimension_numbers = #tpu.dot_dimension_numbers<[1], [0], [0], [1], [0, 0, 1, 1], [], []>} : vector<8x16xf32>, vector<16x512xf32>, vector<8x512xf32> -> vector<8x512xf32>
    %c0_3 = arith.constant 0 : index
    %c0_4 = arith.constant 0 : index
    %3 = vector.load %arg3[%c0_3, %c0_4] : memref<1x512xf32, #tpu.memory_space<vmem>>, vector<1x512xf32>
    %4 = vector.broadcast %3 : vector<1x512xf32> to vector<8x512xf32>
    %5 = arith.addf %2, %4 : vector<8x512xf32>
    %c0_5 = arith.constant 0 : index
    %c0_6 = arith.constant 0 : index
    %6 = vector.load %arg5[%c0_5, %c0_6] : memref<8x512xf32, #tpu.memory_space<vmem>>, vector<8x512xf32>
    tpu.vector_store %arg5[%c0_5, %c0_6], %5 {strides = array<i32>} : memref<8x512xf32, #tpu.memory_space<vmem>>, vector<8x512xf32>,
    %cst_7 = arith.constant 0.000000e+00 : f32
    %7 = vector.broadcast %cst_7 : f32 to vector<1x128xf32>
    %cst_8 = arith.constant 0.000000e+00 : f32
    %8 = vector.broadcast %cst_8 : f32 to vector<1x128xf32>
    %c0_i32 = arith.constant 0 : i32
    %9 = arith.index_cast %c0_i32 : i32 to index
    %c0_9 = arith.constant 0 : index
    %10 = vector.load %arg5[%9, %c0_9] : memref<8x512xf32, #tpu.memory_space<vmem>>, vector<1x512xf32>
    %c0_10 = arith.constant 0 : index
    %c0_11 = arith.constant 0 : index
    %11 = vector.load %arg2[%c0_10, %c0_11] : memref<128x512xf32, #tpu.memory_space<vmem>>, vector<128x512xf32>
    %cst_12 = arith.constant dense<0.000000e+00> : vector<1x512xf32>
    %12 = tpu.matmul %7, %11, %cst_12 {dimension_numbers = #tpu.dot_dimension_numbers<[1], [0], [0], [1], [0, 0, 1, 1], [], []>} : vector<1x128xf32>, vector<128x512xf32>, vector<1x512xf32> -> vector<1x512xf32>
    %13 = arith.addf %10, %12 : vector<1x512xf32>
    %14 = arith.negf %13 : vector<1x512xf32>
    %15 = math.exp %14 : vector<1x512xf32>
    %cst_13 = arith.constant 1.000000e+00 : f32
    %16 = vector.broadcast %cst_13 : f32 to vector<1x512xf32>
    %17 = arith.addf %16, %15 : vector<1x512xf32>
    %18 = arith.divf %16, %17 : vector<1x512xf32>
    %19 = math.tanh %13 : vector<1x512xf32>
    %20 = vector.extract_strided_slice %18 {offsets = [0, 0], sizes = [1, 128], strides = [1, 1]} : vector<1x512xf32> to vector<1x128xf32>
    %21 = vector.extract_strided_slice %18 {offsets = [0, 128], sizes = [1, 128], strides = [1, 1]} : vector<1x512xf32> to vector<1x128xf32>
    %22 = vector.extract_strided_slice %19 {offsets = [0, 256], sizes = [1, 128], strides = [1, 1]} : vector<1x512xf32> to vector<1x128xf32>
    %23 = vector.extract_strided_slice %18 {offsets = [0, 384], sizes = [1, 128], strides = [1, 1]} : vector<1x512xf32> to vector<1x128xf32>
    %24 = arith.mulf %21, %8 : vector<1x128xf32>
    %25 = arith.mulf %20, %22 : vector<1x128xf32>
    %26 = arith.addf %24, %25 : vector<1x128xf32>
    %27 = math.tanh %26 : vector<1x128xf32>
    %28 = arith.mulf %23, %27 : vector<1x128xf32>
    %29 = arith.index_cast %c0_i32 : i32 to index
    %c0_14 = arith.constant 0 : index
    %30 = vector.load %arg4[%29, %c0_14] : memref<8x128xf32, #tpu.memory_space<vmem>>, vector<1x128xf32>
    tpu.vector_store %arg4[%29, %c0_14], %28 {strides = array<i32>} : memref<8x128xf32, #tpu.memory_space<vmem>>, vector<1x128xf32>,
    %c1_i32 = arith.constant 1 : i32
    %31 = arith.index_cast %c1_i32 : i32 to index
    %c0_15 = arith.constant 0 : index
    %32 = vector.load %arg5[%31, %c0_15] : memref<8x512xf32, #tpu.memory_space<vmem>>, vector<1x512xf32>
    %c0_16 = arith.constant 0 : index
    %c0_17 = arith.constant 0 : index
    %33 = vector.load %arg2[%c0_16, %c0_17] : memref<128x512xf32, #tpu.memory_space<vmem>>, vector<128x512xf32>
    %cst_18 = arith.constant dense<0.000000e+00> : vector<1x512xf32>
    %34 = tpu.matmul %28, %33, %cst_18 {dimension_numbers = #tpu.dot_dimension_numbers<[1], [0], [0], [1], [0, 0, 1, 1], [], []>} : vector<1x128xf32>, vector<128x512xf32>, vector<1x512xf32> -> vector<1x512xf32>
    %35 = arith.addf %32, %34 : vector<1x512xf32>
    %36 = arith.negf %35 : vector<1x512xf32>
    %37 = math.exp %36 : vector<1x512xf32>
    %cst_19 = arith.constant 1.000000e+00 : f32
    %38 = vector.broadcast %cst_19 : f32 to vector<1x512xf32>
    %39 = arith.addf %38, %37 : vector<1x512xf32>
    %40 = arith.divf %38, %39 : vector<1x512xf32>
    %41 = math.tanh %35 : vector<1x512xf32>
    %42 = vector.extract_strided_slice %40 {offsets = [0, 0], sizes = [1, 128], strides = [1, 1]} : vector<1x512xf32> to vector<1x128xf32>
    %43 = vector.extract_strided_slice %40 {offsets = [0, 128], sizes = [1, 128], strides = [1, 1]} : vector<1x512xf32> to vector<1x128xf32>
    %44 = vector.extract_strided_slice %41 {offsets = [0, 256], sizes = [1, 128], strides = [1, 1]} : vector<1x512xf32> to vector<1x128xf32>
    %45 = vector.extract_strided_slice %40 {offsets = [0, 384], sizes = [1, 128], strides = [1, 1]} : vector<1x512xf32> to vector<1x128xf32>
    %46 = arith.mulf %43, %26 : vector<1x128xf32>
    %47 = arith.mulf %42, %44 : vector<1x128xf32>
    %48 = arith.addf %46, %47 : vector<1x128xf32>
    %49 = math.tanh %48 : vector<1x128xf32>
    %50 = arith.mulf %45, %49 : vector<1x128xf32>
    %51 = arith.index_cast %c1_i32 : i32 to index
    %c0_20 = arith.constant 0 : index
    %52 = vector.load %arg4[%51, %c0_20] : memref<8x128xf32, #tpu.memory_space<vmem>>, vector<1x128xf32>
    tpu.vector_store %arg4[%51, %c0_20], %50 {strides = array<i32>} : memref<8x128xf32, #tpu.memory_space<vmem>>, vector<1x128xf32>,
    %c2_i32 = arith.constant 2 : i32
    %53 = arith.index_cast %c2_i32 : i32 to index
    %c0_21 = arith.constant 0 : index
    %54 = vector.load %arg5[%53, %c0_21] : memref<8x512xf32, #tpu.memory_space<vmem>>, vector<1x512xf32>
    %c0_22 = arith.constant 0 : index
    %c0_23 = arith.constant 0 : index
    %55 = vector.load %arg2[%c0_22, %c0_23] : memref<128x512xf32, #tpu.memory_space<vmem>>, vector<128x512xf32>
    %cst_24 = arith.constant dense<0.000000e+00> : vector<1x512xf32>
    %56 = tpu.matmul %50, %55, %cst_24 {dimension_numbers = #tpu.dot_dimension_numbers<[1], [0], [0], [1], [0, 0, 1, 1], [], []>} : vector<1x128xf32>, vector<128x512xf32>, vector<1x512xf32> -> vector<1x512xf32>
    %57 = arith.addf %54, %56 : vector<1x512xf32>
    %58 = arith.negf %57 : vector<1x512xf32>
    %59 = math.exp %58 : vector<1x512xf32>
    %cst_25 = arith.constant 1.000000e+00 : f32
    %60 = vector.broadcast %cst_25 : f32 to vector<1x512xf32>
    %61 = arith.addf %60, %59 : vector<1x512xf32>
    %62 = arith.divf %60, %61 : vector<1x512xf32>
    %63 = math.tanh %57 : vector<1x512xf32>
    %64 = vector.extract_strided_slice %62 {offsets = [0, 0], sizes = [1, 128], strides = [1, 1]} : vector<1x512xf32> to vector<1x128xf32>
    %65 = vector.extract_strided_slice %62 {offsets = [0, 128], sizes = [1, 128], strides = [1, 1]} : vector<1x512xf32> to vector<1x128xf32>
    %66 = vector.extract_strided_slice %63 {offsets = [0, 256], sizes = [1, 128], strides = [1, 1]} : vector<1x512xf32> to vector<1x128xf32>
    %67 = vector.extract_strided_slice %62 {offsets = [0, 384], sizes = [1, 128], strides = [1, 1]} : vector<1x512xf32> to vector<1x128xf32>
    %68 = arith.mulf %65, %48 : vector<1x128xf32>
    %69 = arith.mulf %64, %66 : vector<1x128xf32>
    %70 = arith.addf %68, %69 : vector<1x128xf32>
    %71 = math.tanh %70 : vector<1x128xf32>
    %72 = arith.mulf %67, %71 : vector<1x128xf32>
    %73 = arith.index_cast %c2_i32 : i32 to index
    %c0_26 = arith.constant 0 : index
    %74 = vector.load %arg4[%73, %c0_26] : memref<8x128xf32, #tpu.memory_space<vmem>>, vector<1x128xf32>
    tpu.vector_store %arg4[%73, %c0_26], %72 {strides = array<i32>} : memref<8x128xf32, #tpu.memory_space<vmem>>, vector<1x128xf32>,
    %c3_i32 = arith.constant 3 : i32
    %75 = arith.index_cast %c3_i32 : i32 to index
    %c0_27 = arith.constant 0 : index
    %76 = vector.load %arg5[%75, %c0_27] : memref<8x512xf32, #tpu.memory_space<vmem>>, vector<1x512xf32>
    %c0_28 = arith.constant 0 : index
    %c0_29 = arith.constant 0 : index
    %77 = vector.load %arg2[%c0_28, %c0_29] : memref<128x512xf32, #tpu.memory_space<vmem>>, vector<128x512xf32>
    %cst_30 = arith.constant dense<0.000000e+00> : vector<1x512xf32>
    %78 = tpu.matmul %72, %77, %cst_30 {dimension_numbers = #tpu.dot_dimension_numbers<[1], [0], [0], [1], [0, 0, 1, 1], [], []>} : vector<1x128xf32>, vector<128x512xf32>, vector<1x512xf32> -> vector<1x512xf32>
    %79 = arith.addf %76, %78 : vector<1x512xf32>
    %80 = arith.negf %79 : vector<1x512xf32>
    %81 = math.exp %80 : vector<1x512xf32>
    %cst_31 = arith.constant 1.000000e+00 : f32
    %82 = vector.broadcast %cst_31 : f32 to vector<1x512xf32>
    %83 = arith.addf %82, %81 : vector<1x512xf32>
    %84 = arith.divf %82, %83 : vector<1x512xf32>
    %85 = math.tanh %79 : vector<1x512xf32>
    %86 = vector.extract_strided_slice %84 {offsets = [0, 0], sizes = [1, 128], strides = [1, 1]} : vector<1x512xf32> to vector<1x128xf32>
    %87 = vector.extract_strided_slice %84 {offsets = [0, 128], sizes = [1, 128], strides = [1, 1]} : vector<1x512xf32> to vector<1x128xf32>
    %88 = vector.extract_strided_slice %85 {offsets = [0, 256], sizes = [1, 128], strides = [1, 1]} : vector<1x512xf32> to vector<1x128xf32>
    %89 = vector.extract_strided_slice %84 {offsets = [0, 384], sizes = [1, 128], strides = [1, 1]} : vector<1x512xf32> to vector<1x128xf32>
    %90 = arith.mulf %87, %70 : vector<1x128xf32>
    %91 = arith.mulf %86, %88 : vector<1x128xf32>
    %92 = arith.addf %90, %91 : vector<1x128xf32>
    %93 = math.tanh %92 : vector<1x128xf32>
    %94 = arith.mulf %89, %93 : vector<1x128xf32>
    %95 = arith.index_cast %c3_i32 : i32 to index
    %c0_32 = arith.constant 0 : index
    %96 = vector.load %arg4[%95, %c0_32] : memref<8x128xf32, #tpu.memory_space<vmem>>, vector<1x128xf32>
    tpu.vector_store %arg4[%95, %c0_32], %94 {strides = array<i32>} : memref<8x128xf32, #tpu.memory_space<vmem>>, vector<1x128xf32>,
    %c4_i32 = arith.constant 4 : i32
    %97 = arith.index_cast %c4_i32 : i32 to index
    %c0_33 = arith.constant 0 : index
    %98 = vector.load %arg5[%97, %c0_33] : memref<8x512xf32, #tpu.memory_space<vmem>>, vector<1x512xf32>
    %c0_34 = arith.constant 0 : index
    %c0_35 = arith.constant 0 : index
    %99 = vector.load %arg2[%c0_34, %c0_35] : memref<128x512xf32, #tpu.memory_space<vmem>>, vector<128x512xf32>
    %cst_36 = arith.constant dense<0.000000e+00> : vector<1x512xf32>
    %100 = tpu.matmul %94, %99, %cst_36 {dimension_numbers = #tpu.dot_dimension_numbers<[1], [0], [0], [1], [0, 0, 1, 1], [], []>} : vector<1x128xf32>, vector<128x512xf32>, vector<1x512xf32> -> vector<1x512xf32>
    %101 = arith.addf %98, %100 : vector<1x512xf32>
    %102 = arith.negf %101 : vector<1x512xf32>
    %103 = math.exp %102 : vector<1x512xf32>
    %cst_37 = arith.constant 1.000000e+00 : f32
    %104 = vector.broadcast %cst_37 : f32 to vector<1x512xf32>
    %105 = arith.addf %104, %103 : vector<1x512xf32>
    %106 = arith.divf %104, %105 : vector<1x512xf32>
    %107 = math.tanh %101 : vector<1x512xf32>
    %108 = vector.extract_strided_slice %106 {offsets = [0, 0], sizes = [1, 128], strides = [1, 1]} : vector<1x512xf32> to vector<1x128xf32>
    %109 = vector.extract_strided_slice %106 {offsets = [0, 128], sizes = [1, 128], strides = [1, 1]} : vector<1x512xf32> to vector<1x128xf32>
    %110 = vector.extract_strided_slice %107 {offsets = [0, 256], sizes = [1, 128], strides = [1, 1]} : vector<1x512xf32> to vector<1x128xf32>
    %111 = vector.extract_strided_slice %106 {offsets = [0, 384], sizes = [1, 128], strides = [1, 1]} : vector<1x512xf32> to vector<1x128xf32>
    %112 = arith.mulf %109, %92 : vector<1x128xf32>
    %113 = arith.mulf %108, %110 : vector<1x128xf32>
    %114 = arith.addf %112, %113 : vector<1x128xf32>
    %115 = math.tanh %114 : vector<1x128xf32>
    %116 = arith.mulf %111, %115 : vector<1x128xf32>
    %117 = arith.index_cast %c4_i32 : i32 to index
    %c0_38 = arith.constant 0 : index
    %118 = vector.load %arg4[%117, %c0_38] : memref<8x128xf32, #tpu.memory_space<vmem>>, vector<1x128xf32>
    tpu.vector_store %arg4[%117, %c0_38], %116 {strides = array<i32>} : memref<8x128xf32, #tpu.memory_space<vmem>>, vector<1x128xf32>,
    %c5_i32 = arith.constant 5 : i32
    %119 = arith.index_cast %c5_i32 : i32 to index
    %c0_39 = arith.constant 0 : index
    %120 = vector.load %arg5[%119, %c0_39] : memref<8x512xf32, #tpu.memory_space<vmem>>, vector<1x512xf32>
    %c0_40 = arith.constant 0 : index
    %c0_41 = arith.constant 0 : index
    %121 = vector.load %arg2[%c0_40, %c0_41] : memref<128x512xf32, #tpu.memory_space<vmem>>, vector<128x512xf32>
    %cst_42 = arith.constant dense<0.000000e+00> : vector<1x512xf32>
    %122 = tpu.matmul %116, %121, %cst_42 {dimension_numbers = #tpu.dot_dimension_numbers<[1], [0], [0], [1], [0, 0, 1, 1], [], []>} : vector<1x128xf32>, vector<128x512xf32>, vector<1x512xf32> -> vector<1x512xf32>
    %123 = arith.addf %120, %122 : vector<1x512xf32>
    %124 = arith.negf %123 : vector<1x512xf32>
    %125 = math.exp %124 : vector<1x512xf32>
    %cst_43 = arith.constant 1.000000e+00 : f32
    %126 = vector.broadcast %cst_43 : f32 to vector<1x512xf32>
    %127 = arith.addf %126, %125 : vector<1x512xf32>
    %128 = arith.divf %126, %127 : vector<1x512xf32>
    %129 = math.tanh %123 : vector<1x512xf32>
    %130 = vector.extract_strided_slice %128 {offsets = [0, 0], sizes = [1, 128], strides = [1, 1]} : vector<1x512xf32> to vector<1x128xf32>
    %131 = vector.extract_strided_slice %128 {offsets = [0, 128], sizes = [1, 128], strides = [1, 1]} : vector<1x512xf32> to vector<1x128xf32>
    %132 = vector.extract_strided_slice %129 {offsets = [0, 256], sizes = [1, 128], strides = [1, 1]} : vector<1x512xf32> to vector<1x128xf32>
    %133 = vector.extract_strided_slice %128 {offsets = [0, 384], sizes = [1, 128], strides = [1, 1]} : vector<1x512xf32> to vector<1x128xf32>
    %134 = arith.mulf %131, %114 : vector<1x128xf32>
    %135 = arith.mulf %130, %132 : vector<1x128xf32>
    %136 = arith.addf %134, %135 : vector<1x128xf32>
    %137 = math.tanh %136 : vector<1x128xf32>
    %138 = arith.mulf %133, %137 : vector<1x128xf32>
    %139 = arith.index_cast %c5_i32 : i32 to index
    %c0_44 = arith.constant 0 : index
    %140 = vector.load %arg4[%139, %c0_44] : memref<8x128xf32, #tpu.memory_space<vmem>>, vector<1x128xf32>
    tpu.vector_store %arg4[%139, %c0_44], %138 {strides = array<i32>} : memref<8x128xf32, #tpu.memory_space<vmem>>, vector<1x128xf32>,
    %c6_i32 = arith.constant 6 : i32
    %141 = arith.index_cast %c6_i32 : i32 to index
    %c0_45 = arith.constant 0 : index
    %142 = vector.load %arg5[%141, %c0_45] : memref<8x512xf32, #tpu.memory_space<vmem>>, vector<1x512xf32>
    %c0_46 = arith.constant 0 : index
    %c0_47 = arith.constant 0 : index
    %143 = vector.load %arg2[%c0_46, %c0_47] : memref<128x512xf32, #tpu.memory_space<vmem>>, vector<128x512xf32>
    %cst_48 = arith.constant dense<0.000000e+00> : vector<1x512xf32>
    %144 = tpu.matmul %138, %143, %cst_48 {dimension_numbers = #tpu.dot_dimension_numbers<[1], [0], [0], [1], [0, 0, 1, 1], [], []>} : vector<1x128xf32>, vector<128x512xf32>, vector<1x512xf32> -> vector<1x512xf32>
    %145 = arith.addf %142, %144 : vector<1x512xf32>
    %146 = arith.negf %145 : vector<1x512xf32>
    %147 = math.exp %146 : vector<1x512xf32>
    %cst_49 = arith.constant 1.000000e+00 : f32
    %148 = vector.broadcast %cst_49 : f32 to vector<1x512xf32>
    %149 = arith.addf %148, %147 : vector<1x512xf32>
    %150 = arith.divf %148, %149 : vector<1x512xf32>
    %151 = math.tanh %145 : vector<1x512xf32>
    %152 = vector.extract_strided_slice %150 {offsets = [0, 0], sizes = [1, 128], strides = [1, 1]} : vector<1x512xf32> to vector<1x128xf32>
    %153 = vector.extract_strided_slice %150 {offsets = [0, 128], sizes = [1, 128], strides = [1, 1]} : vector<1x512xf32> to vector<1x128xf32>
    %154 = vector.extract_strided_slice %151 {offsets = [0, 256], sizes = [1, 128], strides = [1, 1]} : vector<1x512xf32> to vector<1x128xf32>
    %155 = vector.extract_strided_slice %150 {offsets = [0, 384], sizes = [1, 128], strides = [1, 1]} : vector<1x512xf32> to vector<1x128xf32>
    %156 = arith.mulf %153, %136 : vector<1x128xf32>
    %157 = arith.mulf %152, %154 : vector<1x128xf32>
    %158 = arith.addf %156, %157 : vector<1x128xf32>
    %159 = math.tanh %158 : vector<1x128xf32>
    %160 = arith.mulf %155, %159 : vector<1x128xf32>
    %161 = arith.index_cast %c6_i32 : i32 to index
    %c0_50 = arith.constant 0 : index
    %162 = vector.load %arg4[%161, %c0_50] : memref<8x128xf32, #tpu.memory_space<vmem>>, vector<1x128xf32>
    tpu.vector_store %arg4[%161, %c0_50], %160 {strides = array<i32>} : memref<8x128xf32, #tpu.memory_space<vmem>>, vector<1x128xf32>,
    %c7_i32 = arith.constant 7 : i32
    %163 = arith.index_cast %c7_i32 : i32 to index
    %c0_51 = arith.constant 0 : index
    %164 = vector.load %arg5[%163, %c0_51] : memref<8x512xf32, #tpu.memory_space<vmem>>, vector<1x512xf32>
    %c0_52 = arith.constant 0 : index
    %c0_53 = arith.constant 0 : index
    %165 = vector.load %arg2[%c0_52, %c0_53] : memref<128x512xf32, #tpu.memory_space<vmem>>, vector<128x512xf32>
    %cst_54 = arith.constant dense<0.000000e+00> : vector<1x512xf32>
    %166 = tpu.matmul %160, %165, %cst_54 {dimension_numbers = #tpu.dot_dimension_numbers<[1], [0], [0], [1], [0, 0, 1, 1], [], []>} : vector<1x128xf32>, vector<128x512xf32>, vector<1x512xf32> -> vector<1x512xf32>
    %167 = arith.addf %164, %166 : vector<1x512xf32>
    %168 = arith.negf %167 : vector<1x512xf32>
    %169 = math.exp %168 : vector<1x512xf32>
    %cst_55 = arith.constant 1.000000e+00 : f32
    %170 = vector.broadcast %cst_55 : f32 to vector<1x512xf32>
    %171 = arith.addf %170, %169 : vector<1x512xf32>
    %172 = arith.divf %170, %171 : vector<1x512xf32>
    %173 = math.tanh %167 : vector<1x512xf32>
    %174 = vector.extract_strided_slice %172 {offsets = [0, 0], sizes = [1, 128], strides = [1, 1]} : vector<1x512xf32> to vector<1x128xf32>
    %175 = vector.extract_strided_slice %172 {offsets = [0, 128], sizes = [1, 128], strides = [1, 1]} : vector<1x512xf32> to vector<1x128xf32>
    %176 = vector.extract_strided_slice %173 {offsets = [0, 256], sizes = [1, 128], strides = [1, 1]} : vector<1x512xf32> to vector<1x128xf32>
    %177 = vector.extract_strided_slice %172 {offsets = [0, 384], sizes = [1, 128], strides = [1, 1]} : vector<1x512xf32> to vector<1x128xf32>
    %178 = arith.mulf %175, %158 : vector<1x128xf32>
    %179 = arith.mulf %174, %176 : vector<1x128xf32>
    %180 = arith.addf %178, %179 : vector<1x128xf32>
    %181 = math.tanh %180 : vector<1x128xf32>
    %182 = arith.mulf %177, %181 : vector<1x128xf32>
    %183 = arith.index_cast %c7_i32 : i32 to index
    %c0_56 = arith.constant 0 : index
    %184 = vector.load %arg4[%183, %c0_56] : memref<8x128xf32, #tpu.memory_space<vmem>>, vector<1x128xf32>
    tpu.vector_store %arg4[%183, %c0_56], %182 {strides = array<i32>} : memref<8x128xf32, #tpu.memory_space<vmem>>, vector<1x128xf32>,
    %c8_i32 = arith.constant 8 : i32
    %c0_57 = arith.constant 0 : index
    %c0_58 = arith.constant 0 : index
    %185 = vector.load %arg4[%c0_57, %c0_58] : memref<8x128xf32, #tpu.memory_space<vmem>>, vector<8x128xf32>
    %186 = tpu.iota {dimensions = array<i32: 1>} : vector<8x128xi32>
    %c32_i32 = arith.constant 32 : i32
    %187 = vector.broadcast %c32_i32 : i32 to vector<8x128xi32>
    %188 = arith.cmpi slt, %186, %187 : vector<8x128xi32>
    %cst_59 = arith.constant 0xFF800000 : f32
    %189 = vector.broadcast %cst_59 : f32 to vector<8x128xf32>
    %190 = arith.select %188, %185, %189 : vector<8x128xi1>, vector<8x128xf32>
    %cst_60 = arith.constant dense<0xFF800000> : vector<8xf32>
    %191 = vector.multi_reduction <maximumf>, %190, %cst_60 [1] : vector<8x128xf32> to vector<8xf32>
    %192 = vector.shape_cast %191 : vector<8xf32> to vector<8x1xf32>
    %193 = vector.broadcast %192 : vector<8x1xf32> to vector<8x128xf32>
    %194 = arith.subf %185, %193 : vector<8x128xf32>
    %195 = math.exp %194 : vector<8x128xf32>
    %cst_61 = arith.constant 0.000000e+00 : f32
    %196 = vector.broadcast %cst_61 : f32 to vector<8x128xf32>
    %197 = arith.select %188, %195, %196 : vector<8x128xi1>, vector<8x128xf32>
    %cst_62 = arith.constant dense<0.000000e+00> : vector<8xf32>
    %198 = vector.multi_reduction <add>, %197, %cst_62 [1] : vector<8x128xf32> to vector<8xf32>
    %199 = vector.shape_cast %198 : vector<8xf32> to vector<8x1xf32>
    %200 = math.log %199 : vector<8x1xf32>
    %201 = arith.addf %200, %192 : vector<8x1xf32>
    %202 = vector.broadcast %201 : vector<8x1xf32> to vector<8x128xf32>
    %203 = arith.subf %185, %202 : vector<8x128xf32>
    %c0_63 = arith.constant 0 : index
    %c0_64 = arith.constant 0 : index
    %204 = vector.load %arg4[%c0_63, %c0_64] : memref<8x128xf32, #tpu.memory_space<vmem>>, vector<8x128xf32>
    tpu.vector_store %arg4[%c0_63, %c0_64], %203 {strides = array<i32>} : memref<8x128xf32, #tpu.memory_space<vmem>>, vector<8x128xf32>,
    return
  }
}

</mosaic_0001>

<bundles_post_ra>
// kernel: tpu_custom_call.1
= control target key start
LH: loop header
LB: loop body
LE: loop exit
PB: predicated region body
PF: predicated region fallthrough
CT: control target
= control target key end

     0   :  { %9 = vsyncpa [#allocation4], 0  ;;  %s3583_s0 = inlined_call_operand.hbm [shape: f32[8,16], index: 0, kind: input, shape index: {}]   ;;  %s3584_s1 = inlined_call_operand.hbm [shape: f32[16,512], index: 1, kind: input, shape index: {}]   ;;  %s3585_s2 = inlined_call_operand.hbm [shape: f32[128,512], index: 2, kind: input, shape index: {}]   ;;  %s3586_s3 = inlined_call_operand.vmem [shape: f32[1,512], index: 3, kind: input, shape index: {}]   ;;  %s3587_s4 = inlined_call_operand.hbm [shape: f32[8,128], index: 4, kind: output, shape index: {}]  }
   0x1   :  { %10 = vsyncpa [#allocation7], 0 }
   0x2   :  { %11 = vsyncpa [#allocation5], 0  ;;  %s3043_s15 = smov [#allocation6]   ;;  %s2949_s19 = scalar_lea.hbm %s3584_s1, 1024 }
   0x3   :  { %s27_s16 = sshll.u32 %s3043_s15, 4  ;;  %p2950_p0 = scmp.ne.s32.totalorder %s3584_s1, %s2949_s19  ;;  %s28_s16 = int_to_ptr.vmem [resolvable:$true] %s27_s16 }
   0x4   :  { %p2953_p1 = scmp.lt.u32.totalorder %s2949_s19, %s3584_s1 }
   0x6   :  { %p2955_p2 = pnand %p2953_p1, %p2950_p0 }
   0x8   :  { %2958 = shalt.err (!%p2955_p2)
}
   0x9   :  { %s2959_s24 = scalar_lea.vmem %s28_s16, 1024  ;;  %p2964_p4 = scmp.lt.s32.totalorder %s28_s16, %s28_s16 }
   0xa   :  { %p2960_p3 = scmp.ne.s32.totalorder %s28_s16, %s2959_s24  ;;  %p2965_p5 = scmp.lt.s32.totalorder %s2959_s24, %s2959_s24 }
   0xc   :  { %p2966_p6 = por %p2965_p5, %p2964_p4 }
   0xe   :  { %p2967_p7 = pnand %p2966_p6, %p2960_p3 }
  0x10   :  { %2970 = shalt.err (!%p2967_p7)
}
  0x11   :  { %s3044_s25 = smov 512   ;;  %s3045_s26 = smov 32  }
  0x12   :  { %33 = dma.hbm_to_vmem [thread:$0]  %s3584_s1, 1024, %s28_s16, [#allocation7], %s3044_s25, %s3044_s25, %s3045_s26  }
  0x13   :  { %s3046_s29 = smov [#allocation3]   ;;  %s3047_s5 = smov [#allocation8]  }
  0x14   :  { %s18_s30 = sshll.u32 %s3046_s29, 4  ;;  %s39_s6 = sshll.u32 %s3047_s5, 4  ;;  %s19_s30 = int_to_ptr.vmem [resolvable:$true] %s18_s30  ;;  %s40_s6 = int_to_ptr.vmem [resolvable:$true] %s39_s6 }
  0x15   :  { %s2971_s9 = scalar_lea.hbm %s3583_s0, 128 }
  0x16   :  { %p2972_p8 = scmp.ne.s32.totalorder %s3583_s0, %s2971_s9  ;;  %p2975_p9 = scmp.lt.u32.totalorder %s2971_s9, %s3583_s0 }
  0x18   :  { %p2977_p10 = pnand %p2975_p9, %p2972_p8 }
  0x1a   :  { %2980 = shalt.err (!%p2977_p10)
}
  0x1b   :  { %s2981_s1 = scalar_lea.vmem %s19_s30, 128  ;;  %p2986_p12 = scmp.lt.s32.totalorder %s19_s30, %s19_s30 }
  0x1c   :  { %p2982_p11 = scmp.ne.s32.totalorder %s19_s30, %s2981_s1  ;;  %p2987_p13 = scmp.lt.s32.totalorder %s2981_s1, %s2981_s1 }
  0x1e   :  { %p2988_p0 = por %p2987_p13, %p2986_p12 }
  0x20   :  { %p2989_p1 = pnand %p2988_p0, %p2982_p11 }
  0x22   :  { %2992 = shalt.err (!%p2989_p1)
}
  0x23   :  { %21 = dma.hbm_to_vmem [thread:$0]  %s3583_s0, 128, %s19_s30, [#allocation4]  }
  0x24   :  { %s2993_s18 = scalar_lea.hbm %s3585_s2, 8192 }
  0x25   :  { %p2994_p2 = scmp.ne.s32.totalorder %s3585_s2, %s2993_s18  ;;  %p2997_p3 = scmp.lt.u32.totalorder %s2993_s18, %s3585_s2 }
  0x27   :  { %p2999_p4 = pnand %p2997_p3, %p2994_p2 }
  0x29   :  { %3002 = shalt.err (!%p2999_p4)
}
  0x2a   :  { %s3003_s23 = scalar_lea.vmem %s40_s6, 8192  ;;  %p3008_p6 = scmp.lt.s32.totalorder %s40_s6, %s40_s6 }
  0x2b   :  { %p3004_p5 = scmp.ne.s32.totalorder %s40_s6, %s3003_s23  ;;  %p3009_p7 = scmp.lt.s32.totalorder %s3003_s23, %s3003_s23 }
  0x2d   :  { %p3010_p8 = por %p3009_p7, %p3008_p6 }
  0x2f   :  { %p3011_p9 = pnand %p3010_p8, %p3004_p5 }
  0x31   :  { %3014 = shalt.err (!%p3011_p9)
}
  0x32   :  { %45 = dma.hbm_to_vmem [thread:$0]  %s3585_s2, 8192, %s40_s6, [#allocation7], %s3044_s25, %s3044_s25, %s3045_s26  }
  0x33   :  { %3037 = dma.done.wait [#allocation4], 128  }
  0x34   :  { %3038 = vsyncadd [#allocation4], 4294967168 }
  0x35   :  { %3039 = dma.done.wait [#allocation7], 9216  }
  0x36   :  { %3040 = vsyncadd [#allocation7], 4294958080  ;;  %v3048_v0 = vmov 0.0   ;;  %v59_v1 = vld [vmem:[#allocation6 + $0x8] sm:$0xff]  ;;  %v61_v3 = vld [vmem:[#allocation6 + $0x18] sm:$0xff]  ;;  %vm88_vm0 = vcmask 130048  }
  0x37   :  { %156 = vmatprep.mubr.f32.mxu0 %v3048_v0  ;;  %227 = vmatprep.mubr.f32.mxu1 %v3048_v0  ;;  %v63_v2 = vld [vmem:[#allocation6 + $0x28] sm:$0xff]  ;;  %v65_v5 = vld [vmem:[#allocation6 + $0x38] sm:$0xff]  ;;  %v58_v6 = vld [vmem:[#allocation6] sm:$0xff] }
  0x38   :  { %v2353_v4 = vpack.c.bf16 %v63_v2, %v59_v1  ;;  %v62_v7 = vld [vmem:[#allocation6 + $0x20] sm:$0xff]  ;;  %v2357_v8 = vpack.c.bf16 %v65_v5, %v61_v3  ;;  %v60_v10 = vld [vmem:[#allocation6 + $0x10] sm:$0xff]  ;;  %v57_v12 = vld [vmem:[#allocation3] sm:$0xff] }
  0x39   :  { %v2355_v9 = vpack.c.bf16 %v62_v7, %v58_v6  ;;  %v64_v11 = vld [vmem:[#allocation6 + $0x30] sm:$0xff]  ;;  %v240_v14 = vld [vmem:[#allocation8 + $0x8] sm:$0xff]  ;;  %v242_v16 = vld [vmem:[#allocation8 + $0x18] sm:$0xff] }
  0x3a   :  { %2354 = vmatprep.subr.bf16.mxu0 %v2353_v4  ;;  %v2359_v13 = vpack.c.bf16 %v64_v11, %v60_v10  ;;  %v244_v15 = vld [vmem:[#allocation8 + $0x28] sm:$0xff]  ;;  %2358 = vmatprep.subr.bf16.mxu1 %v2357_v8  ;;  %v246_v18 = vld [vmem:[#allocation8 + $0x38] sm:$0xff]  ;;  %v239_v19 = vld [vmem:[#allocation8] sm:$0xff] }
  0x3b   :  { %2356 = vmatpush1.bf16.msra.mxu0 %v2355_v9  ;;  %v3120_v17 = vpack.c.bf16 %v244_v15, %v240_v14  ;;  %v243_v20 = vld [vmem:[#allocation8 + $0x20] sm:$0xff]  ;;  %v3122_v21 = vpack.c.bf16 %v246_v18, %v242_v16  ;;  %v241_v23 = vld [vmem:[#allocation8 + $0x10] sm:$0xff]  ;;  %v248_v25 = vld [vmem:[#allocation8 + $0x48] sm:$0xff] }
  0x3c   :  { %2360 = vmatpush1.bf16.msra.mxu1 %v2359_v13  ;;  %v3124_v22 = vpack.c.bf16 %v243_v20, %v239_v19  ;;  %v245_v24 = vld [vmem:[#allocation8 + $0x30] sm:$0xff]  ;;  %v252_v27 = vld [vmem:[#allocation8 + $0x68] sm:$0xff]  ;;  %v250_v28 = vld [vmem:[#allocation8 + $0x58] sm:$0xff] }
  0x3d   :  { %2362 = vmatprep.subr.bf16.mxu0 %v3120_v17  ;;  %v3127_v26 = vpack.c.bf16 %v245_v24, %v241_v23  ;;  %v254_v29 = vld [vmem:[#allocation8 + $0x78] sm:$0xff]  ;;  %2394 = vmatprep.subr.bf16.mxu1 %v3122_v21  ;;  %v3131_v30 = vpack.c.bf16 %v252_v27, %v248_v25  ;;  %v247_v32 = vld [vmem:[#allocation8 + $0x40] sm:$0xff]  ;;  %v249_v34 = vld [vmem:[#allocation8 + $0x50] sm:$0xff] }
  0x3e   :  { %2343 = vmatmul.mubr.msk.f32.vlgmr.msra.gmra.mrb[0].mxu0 %vm88_vm0, %v57_v12  ;;  %v3133_v31 = vpack.c.bf16 %v254_v29, %v250_v28  ;;  %v251_v33 = vld [vmem:[#allocation8 + $0x60] sm:$0xff]  ;;  %v253_v36 = vld [vmem:[#allocation8 + $0x70] sm:$0xff]  ;;  %v256_v37 = vld [vmem:[#allocation8 + $0x88] sm:$0xff] }
  0x3f   :  { %2344 = vmatmul.mubr.msk.f32.vlgmr.msra.gmra.mrb[0].mxu1 %vm88_vm0, %v57_v12  ;;  %2364 = vmatpush1.bf16.msra.mxu0 %v3124_v22  ;;  %v3137_v35 = vpack.c.bf16 %v251_v33, %v247_v32  ;;  %v260_v38 = vld [vmem:[#allocation8 + $0xa8] sm:$0xff]  ;;  %v3141_v39 = vpack.c.bf16 %v253_v36, %v249_v34  ;;  %v258_v41 = vld [vmem:[#allocation8 + $0x98] sm:$0xff]  ;;  %v255_v43 = vld [vmem:[#allocation8 + $0x80] sm:$0xff] }
  0x40   :  { %2396 = vmatpush1.bf16.msra.mxu1 %v3127_v26  ;;  %2366 = vmatprep.subr.bf16.mxu0 %v3131_v30  ;;  %v3143_v40 = vpack.c.bf16 %v260_v38, %v256_v37  ;;  %v262_v42 = vld [vmem:[#allocation8 + $0xb8] sm:$0xff]  ;;  %v259_v45 = vld [vmem:[#allocation8 + $0xa0] sm:$0xff]  ;;  %v257_v46 = vld [vmem:[#allocation8 + $0x90] sm:$0xff] }
  0x41   :  { %2398 = vmatprep.subr.bf16.mxu1 %v3133_v31  ;;  %v3146_v44 = vpack.c.bf16 %v262_v42, %v258_v41  ;;  %v261_v47 = vld [vmem:[#allocation8 + $0xb0] sm:$0xff]  ;;  %367 = vmatprep.mubr.f32.mxu0 %v3048_v0  ;;  %v264_v48 = vld [vmem:[#allocation8 + $0xc8] sm:$0xff]  ;;  %v266_v50 = vld [vmem:[#allocation8 + $0xd8] sm:$0xff]  ;;  %v3151_v51 = vpack.c.bf16 %v259_v45, %v255_v43 }
  0x42   :  { %v268_v49 = vld [vmem:[#allocation8 + $0xe8] sm:$0xff]  ;;  %438 = vmatprep.mubr.f32.mxu1 %v3048_v0  ;;  %v270_v52 = vld [vmem:[#allocation8 + $0xf8] sm:$0xff]  ;;  %v3155_v53 = vpack.c.bf16 %v261_v47, %v257_v46  ;;  %v263_v55 = vld [vmem:[#allocation8 + $0xc0] sm:$0xff] }
  0x43   :  { %2368 = vmatpush1.bf16.msra.mxu0 %v3137_v35  ;;  %v3157_v54 = vpack.c.bf16 %v268_v49, %v264_v48  ;;  %v267_v56 = vld [vmem:[#allocation8 + $0xe0] sm:$0xff]  ;;  %v265_v57 = vld [vmem:[#allocation8 + $0xd0] sm:$0xff]  ;;  %v3160_v58 = vpack.c.bf16 %v270_v52, %v266_v50  ;;  %v272_v60 = vld [vmem:[#allocation8 + $0x108] sm:$0xff] }
  0x44   :  { %2400 = vmatpush1.bf16.msra.mxu1 %v3141_v39  ;;  %2370 = vmatprep.subr.bf16.mxu0 %v3143_v40  ;;  %v269_v59 = vld [vmem:[#allocation8 + $0xf0] sm:$0xff]  ;;  %v276_v61 = vld [vmem:[#allocation8 + $0x128] sm:$0xff]  ;;  %v274_v62 = vld [vmem:[#allocation8 + $0x118] sm:$0xff]  ;;  %v3163_v1 = vpack.c.bf16 %v267_v56, %v263_v55 }
  0x45   :  { %2402 = vmatprep.subr.bf16.mxu1 %v3146_v44  ;;  %v278_v63 = vld [vmem:[#allocation8 + $0x138] sm:$0xff]  ;;  %v3167_v2 = vpack.c.bf16 %v269_v59, %v265_v57  ;;  %v3169_v3 = vpack.c.bf16 %v276_v61, %v272_v60  ;;  %v271_v4 = vld [vmem:[#allocation8 + $0x100] sm:$0xff]  ;;  %v273_v6 = vld [vmem:[#allocation8 + $0x110] sm:$0xff]  ;;  %v68_v61 = vlaneseq }
  0x46   :  { %v275_v5 = vld [vmem:[#allocation8 + $0x120] sm:$0xff]  ;;  %v3172_v7 = vpack.c.bf16 %v278_v63, %v274_v62  ;;  %v277_v8 = vld [vmem:[#allocation8 + $0x130] sm:$0xff]  ;;  %v280_v9 = vld [vmem:[#allocation8 + $0x148] sm:$0xff] }
  0x47   :  { %2372 = vmatpush1.bf16.msra.mxu0 %v3151_v51  ;;  %v284_v10 = vld [vmem:[#allocation8 + $0x168] sm:$0xff]  ;;  %v282_v11 = vld [vmem:[#allocation8 + $0x158] sm:$0xff]  ;;  %v3175_v13 = vpack.c.bf16 %v275_v5, %v271_v4  ;;  %v3179_v14 = vpack.c.bf16 %v277_v8, %v273_v6  ;;  %v279_v16 = vld [vmem:[#allocation8 + $0x140] sm:$0xff]  ;;  %v69_v62 = vshrl.u32 %v68_v61, 7 }
  0x48   :  { %2404 = vmatpush1.bf16.msra.mxu1 %v3155_v53  ;;  %2374 = vmatprep.subr.bf16.mxu0 %v3157_v54  ;;  %v286_v12 = vld [vmem:[#allocation8 + $0x178] sm:$0xff]  ;;  %v3181_v15 = vpack.c.bf16 %v284_v10, %v280_v9  ;;  %v283_v18 = vld [vmem:[#allocation8 + $0x160] sm:$0xff]  ;;  %v281_v19 = vld [vmem:[#allocation8 + $0x150] sm:$0xff] }
  0x49   :  { %2406 = vmatprep.subr.bf16.mxu1 %v3160_v58  ;;  %v3184_v20 = vpack.c.bf16 %v286_v12, %v282_v11  ;;  %v285_v23 = vld [vmem:[#allocation8 + $0x170] sm:$0xff]  ;;  %v288_v24 = vld [vmem:[#allocation8 + $0x188] sm:$0xff]  ;;  %v290_v27 = vld [vmem:[#allocation8 + $0x198] sm:$0xff]  ;;  %v3187_v29 = vpack.c.bf16 %v283_v18, %v279_v16  ;;  %v70_v63 = vsub.s32 0, %v69_v62  ;;  %v78_v5 = vsub.s32 2, %v69_v62 }
  0x4a   :  { %v292_v25 = vld [vmem:[#allocation8 + $0x1a8] sm:$0xff]  ;;  %v294_v28 = vld [vmem:[#allocation8 + $0x1b8] sm:$0xff]  ;;  %v3191_v32 = vpack.c.bf16 %v285_v23, %v281_v19  ;;  %v287_v34 = vld [vmem:[#allocation8 + $0x180] sm:$0xff]  ;;  %v74_v6 = vsub.s32 1, %v69_v62  ;;  %v82_v8 = vsub.s32 3, %v69_v62 }
  0x4b   :  { %2376 = vmatpush1.bf16.msra.mxu0 %v3163_v1  ;;  %v3193_v33 = vpack.c.bf16 %v292_v25, %v288_v24  ;;  %v291_v36 = vld [vmem:[#allocation8 + $0x1a0] sm:$0xff]  ;;  %v289_v37 = vld [vmem:[#allocation8 + $0x190] sm:$0xff]  ;;  %v3196_v38 = vpack.c.bf16 %v294_v28, %v290_v27  ;;  %v296_v42 = vld [vmem:[#allocation8 + $0x1c8] sm:$0xff] }
  0x4c   :  { %2408 = vmatpush1.bf16.msra.mxu1 %v3167_v2  ;;  %2378 = vmatprep.subr.bf16.mxu0 %v3169_v3  ;;  %v293_v41 = vld [vmem:[#allocation8 + $0x1b0] sm:$0xff]  ;;  %v300_v43 = vld [vmem:[#allocation8 + $0x1e8] sm:$0xff]  ;;  %v298_v45 = vld [vmem:[#allocation8 + $0x1d8] sm:$0xff]  ;;  %v3199_v47 = vpack.c.bf16 %v291_v36, %v287_v34  ;;  %v3049_v34 = vmov 1966171168  }
  0x4d   :  { %2410 = vmatprep.subr.bf16.mxu1 %v3172_v7  ;;  %v302_v46 = vld [vmem:[#allocation8 + $0x1f8] sm:$0xff]  ;;  %v3203_v48 = vpack.c.bf16 %v293_v41, %v289_v37  ;;  %v3205_v49 = vpack.c.bf16 %v300_v43, %v296_v42  ;;  %v295_v50 = vld [vmem:[#allocation8 + $0x1c0] sm:$0xff]  ;;  %v297_v56 = vld [vmem:[#allocation8 + $0x1d0] sm:$0xff]  ;;  %v452_v36 = vunpack.c.l.s4 %v3049_v34 }
  0x4e   :  { %v299_v52 = vld [vmem:[#allocation8 + $0x1e0] sm:$0xff]  ;;  %v3208_v55 = vpack.c.bf16 %v302_v46, %v298_v45  ;;  %v301_v57 = vld [vmem:[#allocation8 + $0x1f0] sm:$0xff]  ;;  %v66_v4 = vld [vmem:[%s3586_s3] sm:$0xf]  ;;  %s3050_s3 = smov [#allocation9]  }
  0x4f   :  { %2380 = vmatpush1.bf16.msra.mxu0 %v3175_v13  ;;  %v3211_v59 = vpack.c.bf16 %v299_v52, %v295_v50  ;;  %v3215_v60 = vpack.c.bf16 %v301_v57, %v297_v56  ;;  %v71_v9 = vrot.slane %v66_v4, %v70_v63  ;;  %v79_v10 = vrot.slane %v66_v4, %v78_v5  ;;  %s2333_s26 = sshll.u32 %s3050_s3, 4  ;;  %s2334_s26 = int_to_ptr.vmem [resolvable:$true] %s2333_s26 }
  0x50   :  { %2412 = vmatpush1.bf16.msra.mxu1 %v3179_v14  ;;  %2382 = vmatprep.subr.bf16.mxu0 %v3181_v15  ;;  %v75_v11 = vrot.slane %v66_v4, %v74_v6  ;;  %v83_v12 = vrot.slane %v66_v4, %v82_v8  ;;  %v453_v37 = vunpack.c.0.s8 %v452_v36  ;;  %s3015_s27 = scalar_lea.vmem %s2334_s26, 128  ;;  %p3020_p11 = scmp.lt.s32.totalorder %s2334_s26, %s2334_s26 }
  0x51   :  { %2414 = vmatprep.subr.bf16.mxu1 %v3184_v20  ;;  %p3016_p10 = scmp.ne.s32.totalorder %s2334_s26, %s3015_s27  ;;  %p3021_p12 = scmp.lt.s32.totalorder %s3015_s27, %s3015_s27 }
  0x52   :  { %v3262_v41 = vsub.s32 %v453_v37, %v69_v62 }
  0x53   :  { %2384 = vmatpush1.bf16.msra.mxu0 %v3187_v29  ;;  %p3022_p13 = por %p3021_p12, %p3020_p11 }
  0x54   :  { %2416 = vmatpush1.bf16.msra.mxu1 %v3191_v32  ;;  %2386 = vmatprep.subr.bf16.mxu0 %v3193_v33 }
  0x55   :  { %2418 = vmatprep.subr.bf16.mxu1 %v3196_v38  ;;  %p3023_p0 = pnand %p3022_p13, %p3016_p10 }
  0x57   :  { %2388 = vmatpush1.bf16.msra.mxu0 %v3199_v47 }
  0x58   :  { %2420 = vmatpush1.bf16.msra.mxu1 %v3203_v48  ;;  %2390 = vmatprep.subr.bf16.mxu0 %v3205_v49 }
  0x59   :  { %2422 = vmatprep.subr.bf16.mxu1 %v3208_v55 }
  0x5b   :  { %2392 = vmatpush1.bf16.msra.mxu0 %v3211_v59 }
  0x5c   :  { %2424 = vmatpush1.bf16.msra.mxu1 %v3215_v60  ;;  %2426 = vmatprep.subr.bf16.mxu0 %v3120_v17 }
  0x5d   :  { %2458 = vmatprep.subr.bf16.mxu1 %v3122_v21 }
  0x5e   :  { %368 = vmatmul.mubr.f32.vlgmr.msra.gmra.mrb[2].mxu0 %v3048_v0 }
  0x5f   :  { %439 = vmatmul.mubr.f32.vlgmr.msra.gmra.mrb[2].mxu1 %v3048_v0  ;;  %2428 = vmatpush1.bf16.msra.mxu0 %v3124_v22 }
  0x60   :  { %2460 = vmatpush1.bf16.msra.mxu1 %v3127_v26  ;;  %2430 = vmatprep.subr.bf16.mxu0 %v3131_v30 }
  0x61   :  { %2462 = vmatprep.subr.bf16.mxu1 %v3133_v31  ;;  %626 = vmatprep.mubr.f32.mxu0 %v3048_v0 }
  0x62   :  { %697 = vmatprep.mubr.f32.mxu1 %v3048_v0 }
  0x63   :  { %2432 = vmatpush1.bf16.msra.mxu0 %v3137_v35 }
  0x64   :  { %2464 = vmatpush1.bf16.msra.mxu1 %v3141_v39  ;;  %2434 = vmatprep.subr.bf16.mxu0 %v3143_v40 }
  0x65   :  { %2466 = vmatprep.subr.bf16.mxu1 %v3146_v44 }
  0x67   :  { %2436 = vmatpush1.bf16.msra.mxu0 %v3151_v51 }
  0x68   :  { %2468 = vmatpush1.bf16.msra.mxu1 %v3155_v53  ;;  %2438 = vmatprep.subr.bf16.mxu0 %v3157_v54 }
  0x69   :  { %2470 = vmatprep.subr.bf16.mxu1 %v3160_v58 }
  0x6b   :  { %2440 = vmatpush1.bf16.msra.mxu0 %v3163_v1 }
  0x6c   :  { %2472 = vmatpush1.bf16.msra.mxu1 %v3167_v2  ;;  %2442 = vmatprep.subr.bf16.mxu0 %v3169_v3 }
  0x6d   :  { %2474 = vmatprep.subr.bf16.mxu1 %v3172_v7 }
  0x6f   :  { %2444 = vmatpush1.bf16.msra.mxu0 %v3175_v13 }
  0x70   :  { %2476 = vmatpush1.bf16.msra.mxu1 %v3179_v14  ;;  %2446 = vmatprep.subr.bf16.mxu0 %v3181_v15 }
  0x71   :  { %2478 = vmatprep.subr.bf16.mxu1 %v3184_v20 }
  0x73   :  { %2448 = vmatpush1.bf16.msra.mxu0 %v3187_v29 }
  0x74   :  { %2480 = vmatpush1.bf16.msra.mxu1 %v3191_v32  ;;  %2450 = vmatprep.subr.bf16.mxu0 %v3193_v33 }
  0x75   :  { %2482 = vmatprep.subr.bf16.mxu1 %v3196_v38 }
  0x77   :  { %2452 = vmatpush1.bf16.msra.mxu0 %v3199_v47 }
  0x78   :  { %2484 = vmatpush1.bf16.msra.mxu1 %v3203_v48  ;;  %2454 = vmatprep.subr.bf16.mxu0 %v3205_v49 }
  0x79   :  { %2486 = vmatprep.subr.bf16.mxu1 %v3208_v55 }
  0x7b   :  { %2456 = vmatpush1.bf16.msra.mxu0 %v3211_v59 }
  0x7c   :  { %2488 = vmatpush1.bf16.msra.mxu1 %v3215_v60  ;;  %2490 = vmatprep.subr.bf16.mxu0 %v3120_v17 }
  0x7d   :  { %2522 = vmatprep.subr.bf16.mxu1 %v3122_v21 }
 0x111   :  { %v158_v16 = vpop.f32.mrb[0].mxu0 }
 0x112   :  { %v159_v18 = vadd.f32 %v158_v16, %v71_v9  ;;  %v229_v19 = vpop.f32.mrb[0].mxu1  ;;  %v160_v23 = vpop.f32.mrb[1].mxu0 }
 0x113   :  { %v230_v24 = vadd.f32 %v229_v19, %v79_v10  ;;  %v161_v25 = vadd.f32 %v160_v23, %v75_v11  ;;  %v231_v27 = vpop.f32.mrb[1].mxu1 }
 0x114   :  { %234 = vst [vmem:[#allocation2] sm:$0xff] %v159_v18  ;;  %v232_v28 = vadd.f32 %v231_v27, %v83_v12 }
 0x115   :  { %236 = vst [vmem:[#allocation2 + $0x10] sm:$0xff] %v230_v24  ;;  %235 = vst [vmem:[#allocation2 + $0x8] sm:$0xff] %v161_v25 }
 0x116   :  { %237 = vst [vmem:[#allocation2 + $0x18] sm:$0xff] %v232_v28 }
 0x11d   :  { %v238_v5 = vld [vmem:[#allocation2] ss:$8 sm:$0xf] }
 0x131   :  { %v369_v42 = vpop.f32.mrb[2].mxu0 }
 0x132   :  { %v440_v43 = vpop.f32.mrb[2].mxu1  ;;  %v371_v45 = vpop.f32.mrb[3].mxu0 }
 0x133   :  { %v449_v46 = vcombine.low %v369_v42, %v371_v45  ;;  %v442_v50 = vpop.f32.mrb[3].mxu1 }
 0x134   :  { %v450_v52 = vcombine.low %v440_v43, %v442_v50 }
 0x135   :  { %v457_v56 = vrot.slane %v449_v46, %v3262_v41 }
 0x136   :  { %v464_v57 = vrot.slane %v450_v52, %v3262_v41 }
 0x138   :  { %v465_v63 = vcombine.low %v457_v56, %v464_v57  ;;  %v497_v56 = vld [vmem:[#allocation2 + $0x1] ss:$8 sm:$0xf] }
 0x13a   :  { %v472_v4 = vrot.slane %v465_v63, %v3262_v41 }
 0x13c   :  { %v474_v6 = vadd.f32 %v472_v4, %v238_v5 }
 0x13e   :  { %v2345_v8 = vmul.f32 -1.442695, %v474_v6 }
 0x140   :  { %2881 = vpow2.f32 %v2345_v8 }
 0x141   :  { %2883 = vtanh.f32 %v474_v6 }
 0x14a   :  { %v2882_v9 = vpop.eup %2881 }
 0x14b   :  { %v478_v62 = vadd.f32 1.0, %v2882_v9  ;;  %v2884_v10 = vpop.eup %2883 }
 0x14c   :  { %v487_v16 = vrot.slane %v2884_v10, 2 }
 0x14d   :  { %2885 = vrcp.f32 %v478_v62 }
 0x157   :  { %v2886_v11 = vpop.eup %2885 }
 0x158   :  { %v483_v12 = vrot.slane %v2886_v11, 1  ;;  %v489_v19 = vmul.f32 %v2886_v11, %v487_v16  ;;  %v492_v24 = vrot.slane %v2886_v11, 3 }
 0x15a   :  { %v485_v18 = vmul.f32 0.0, %v483_v12 }
 0x15c   :  { %v3267_v23 = vadd.f32 %v489_v19, %v485_v18  ;;  %v1275_v18 = vld [vmem:[#allocation8] sm:$0xff] }
 0x15d   :  { %v1279_v19 = vld [vmem:[#allocation8 + $0x20] sm:$0xff] }
 0x15e   :  { %2887 = vtanh.f32 %v3267_v23 }
 0x168   :  { %v2888_v25 = vpop.eup %2887 }
 0x169   :  { %v494_v27 = vmul.f32 %v2888_v25, %v492_v24  ;;  %v3352_v24 = vpack.c.bf16 %v1279_v19, %v1275_v18  ;;  %v1277_v25 = vld [vmem:[#allocation8 + $0x10] sm:$0xff]  ;;  %v1322_v18 = vld [vmem:[#allocation8 + $0x178] sm:$0xff]  ;;  %v1315_v19 = vld [vmem:[#allocation8 + $0x140] sm:$0xff] }
 0x16b   :  { %495 = vst [vmem:[#allocation9] sm:$0x1] %v494_v27  ;;  %627 = vmatmul.mubr.f32.vlgmr.msra.gmra.mrb[4].mxu0 %v494_v27  ;;  %698 = vmatmul.mubr.f32.vlgmr.msra.gmra.mrb[4].mxu1 %v494_v27  ;;  %v1281_v27 = vld [vmem:[#allocation8 + $0x30] sm:$0xff] }
 0x16c   :  { %2492 = vmatpush1.bf16.msra.mxu0 %v3124_v22  ;;  %2524 = vmatpush1.bf16.msra.mxu1 %v3127_v26 }
 0x16d   :  { %2494 = vmatprep.subr.bf16.mxu0 %v3131_v30  ;;  %2526 = vmatprep.subr.bf16.mxu1 %v3133_v31 }
 0x16e   :  { %885 = vmatprep.mubr.f32.mxu0 %v3048_v0  ;;  %956 = vmatprep.mubr.f32.mxu1 %v3048_v0 }
 0x170   :  { %2496 = vmatpush1.bf16.msra.mxu0 %v3137_v35  ;;  %2528 = vmatpush1.bf16.msra.mxu1 %v3141_v39 }
 0x171   :  { %2498 = vmatprep.subr.bf16.mxu0 %v3143_v40  ;;  %2530 = vmatprep.subr.bf16.mxu1 %v3146_v44 }
 0x174   :  { %2500 = vmatpush1.bf16.msra.mxu0 %v3151_v51  ;;  %2532 = vmatpush1.bf16.msra.mxu1 %v3155_v53 }
 0x175   :  { %2502 = vmatprep.subr.bf16.mxu0 %v3157_v54  ;;  %2534 = vmatprep.subr.bf16.mxu1 %v3160_v58 }
 0x178   :  { %2504 = vmatpush1.bf16.msra.mxu0 %v3163_v1  ;;  %2536 = vmatpush1.bf16.msra.mxu1 %v3167_v2 }
 0x179   :  { %2506 = vmatprep.subr.bf16.mxu0 %v3169_v3  ;;  %2538 = vmatprep.subr.bf16.mxu1 %v3172_v7 }
 0x17c   :  { %2508 = vmatpush1.bf16.msra.mxu0 %v3175_v13  ;;  %2540 = vmatpush1.bf16.msra.mxu1 %v3179_v14 }
 0x17d   :  { %2510 = vmatprep.subr.bf16.mxu0 %v3181_v15  ;;  %2542 = vmatprep.subr.bf16.mxu1 %v3184_v20 }
 0x180   :  { %2512 = vmatpush1.bf16.msra.mxu0 %v3187_v29  ;;  %2544 = vmatpush1.bf16.msra.mxu1 %v3191_v32 }
 0x181   :  { %2514 = vmatprep.subr.bf16.mxu0 %v3193_v33  ;;  %2546 = vmatprep.subr.bf16.mxu1 %v3196_v38 }
 0x184   :  { %2516 = vmatpush1.bf16.msra.mxu0 %v3199_v47  ;;  %2548 = vmatpush1.bf16.msra.mxu1 %v3203_v48 }
 0x185   :  { %2518 = vmatprep.subr.bf16.mxu0 %v3205_v49  ;;  %2550 = vmatprep.subr.bf16.mxu1 %v3208_v55 }
 0x188   :  { %2520 = vmatpush1.bf16.msra.mxu0 %v3211_v59  ;;  %2552 = vmatpush1.bf16.msra.mxu1 %v3215_v60 }
 0x189   :  { %2554 = vmatprep.subr.bf16.mxu0 %v3120_v17  ;;  %2586 = vmatprep.subr.bf16.mxu1 %v3122_v21 }
 0x23e   :  { %v628_v28 = vpop.f32.mrb[4].mxu0  ;;  %v699_v34 = vpop.f32.mrb[4].mxu1 }
 0x23f   :  { %v630_v36 = vpop.f32.mrb[5].mxu0  ;;  %v701_v37 = vpop.f32.mrb[5].mxu1 }
 0x240   :  { %v708_v42 = vcombine.low %v628_v28, %v630_v36  ;;  %v709_v43 = vcombine.low %v699_v34, %v701_v37  ;;  %v3355_v28 = vpack.c.bf16 %v1281_v27, %v1277_v25  ;;  %v1284_v34 = vld [vmem:[#allocation8 + $0x48] sm:$0xff]  ;;  %v1286_v37 = vld [vmem:[#allocation8 + $0x58] sm:$0xff]  ;;  %v1319_v25 = vld [vmem:[#allocation8 + $0x160] sm:$0xff] }
 0x241   :  { %v1288_v36 = vld [vmem:[#allocation8 + $0x68] sm:$0xff] }
 0x242   :  { %v716_v45 = vrot.slane %v708_v42, %v3262_v41  ;;  %v723_v46 = vrot.slane %v709_v43, %v3262_v41  ;;  %v3360_v42 = vpack.c.bf16 %v1288_v36, %v1284_v34  ;;  %v1290_v43 = vld [vmem:[#allocation8 + $0x78] sm:$0xff]  ;;  %v3412_v34 = vpack.c.bf16 %v1319_v25, %v1315_v19  ;;  %v1317_v36 = vld [vmem:[#allocation8 + $0x150] sm:$0xff] }
 0x244   :  { %v724_v50 = vcombine.low %v716_v45, %v723_v46  ;;  %v1283_v45 = vld [vmem:[#allocation8 + $0x40] sm:$0xff] }
 0x245   :  { %v1287_v46 = vld [vmem:[#allocation8 + $0x60] sm:$0xff] }
 0x246   :  { %v731_v52 = vrot.slane %v724_v50, %v3262_v41  ;;  %v3362_v50 = vpack.c.bf16 %v1290_v43, %v1286_v37  ;;  %v1321_v37 = vld [vmem:[#allocation8 + $0x170] sm:$0xff]  ;;  %v1324_v43 = vld [vmem:[#allocation8 + $0x188] sm:$0xff] }
 0x248   :  { %v733_v57 = vadd.f32 %v731_v52, %v497_v56  ;;  %v3364_v52 = vpack.c.bf16 %v1287_v46, %v1283_v45  ;;  %v1285_v56 = vld [vmem:[#allocation8 + $0x50] sm:$0xff]  ;;  %v3415_v45 = vpack.c.bf16 %v1321_v37, %v1317_v36  ;;  %v1328_v46 = vld [vmem:[#allocation8 + $0x1a8] sm:$0xff] }
 0x249   :  { %v1015_v36 = vld [vmem:[#allocation2 + $0x3] ss:$8 sm:$0xf] }
 0x24a   :  { %v2346_v63 = vmul.f32 -1.442695, %v733_v57 }
 0x24c   :  { %2889 = vpow2.f32 %v2346_v63 }
 0x24d   :  { %2891 = vtanh.f32 %v733_v57  ;;  %v1289_v57 = vld [vmem:[#allocation8 + $0x70] sm:$0xff] }
 0x24e   :  { %v3367_v63 = vpack.c.bf16 %v1289_v57, %v1285_v56  ;;  %v1326_v56 = vld [vmem:[#allocation8 + $0x198] sm:$0xff] }
 0x24f   :  { %v1330_v57 = vld [vmem:[#allocation8 + $0x1b8] sm:$0xff] }
 0x256   :  { %v2890_v17 = vpop.eup %2889 }
 0x257   :  { %v737_v4 = vadd.f32 1.0, %v2890_v17  ;;  %v2892_v21 = vpop.eup %2891  ;;  %v1292_v17 = vld [vmem:[#allocation8 + $0x88] sm:$0xff] }
 0x258   :  { %v746_v8 = vrot.slane %v2892_v21, 2  ;;  %v1294_v21 = vld [vmem:[#allocation8 + $0x98] sm:$0xff] }
 0x259   :  { %2893 = vrcp.f32 %v737_v4  ;;  %v1296_v4 = vld [vmem:[#allocation8 + $0xa8] sm:$0xff] }
 0x263   :  { %v2894_v5 = vpop.eup %2893 }
 0x264   :  { %v742_v6 = vrot.slane %v2894_v5, 1  ;;  %v748_v62 = vmul.f32 %v2894_v5, %v746_v8  ;;  %v751_v11 = vrot.slane %v2894_v5, 3  ;;  %v3372_v5 = vpack.c.bf16 %v1296_v4, %v1292_v17  ;;  %v1291_v8 = vld [vmem:[#allocation8 + $0x80] sm:$0xff] }
 0x265   :  { %v3418_v17 = vpack.c.bf16 %v1328_v46, %v1324_v43  ;;  %v3420_v4 = vpack.c.bf16 %v1330_v57, %v1326_v56 }
 0x266   :  { %v744_v9 = vmul.f32 %v742_v6, %v3267_v23  ;;  %v1298_v6 = vld [vmem:[#allocation8 + $0xb8] sm:$0xff] }
 0x268   :  { %v749_v10 = vadd.f32 %v748_v62, %v744_v9  ;;  %v1295_v9 = vld [vmem:[#allocation8 + $0xa0] sm:$0xff]  ;;  %v3374_v62 = vpack.c.bf16 %v1298_v6, %v1294_v21 }
 0x269   :  { %v1323_v21 = vld [vmem:[#allocation8 + $0x180] sm:$0xff] }
 0x26a   :  { %2895 = vtanh.f32 %v749_v10  ;;  %v1327_v6 = vld [vmem:[#allocation8 + $0x1a0] sm:$0xff] }
 0x274   :  { %v2896_v12 = vpop.eup %2895 }
 0x275   :  { %v753_v16 = vmul.f32 %v2896_v12, %v751_v11  ;;  %v1293_v11 = vld [vmem:[#allocation8 + $0x90] sm:$0xff] }
 0x276   :  { %v1297_v12 = vld [vmem:[#allocation8 + $0xb0] sm:$0xff] }
 0x277   :  { %754 = vst [vmem:[#allocation9 + $0x1] sm:$0x1] %v753_v16  ;;  %886 = vmatmul.mubr.f32.vlgmr.msra.gmra.mrb[6].mxu0 %v753_v16  ;;  %957 = vmatmul.mubr.f32.vlgmr.msra.gmra.mrb[6].mxu1 %v753_v16  ;;  %v3379_v16 = vpack.c.bf16 %v1297_v12, %v1293_v11  ;;  %v1329_v11 = vld [vmem:[#allocation8 + $0x1b0] sm:$0xff]  ;;  %v1332_v12 = vld [vmem:[#allocation8 + $0x1c8] sm:$0xff] }
 0x278   :  { %2556 = vmatpush1.bf16.msra.mxu0 %v3124_v22  ;;  %2588 = vmatpush1.bf16.msra.mxu1 %v3127_v26 }
 0x279   :  { %2558 = vmatprep.subr.bf16.mxu0 %v3131_v30  ;;  %2590 = vmatprep.subr.bf16.mxu1 %v3133_v31 }
 0x27a   :  { %1144 = vmatprep.mubr.f32.mxu0 %v3048_v0  ;;  %1215 = vmatprep.mubr.f32.mxu1 %v3048_v0 }
 0x27c   :  { %2560 = vmatpush1.bf16.msra.mxu0 %v3137_v35  ;;  %2592 = vmatpush1.bf16.msra.mxu1 %v3141_v39 }
 0x27d   :  { %2562 = vmatprep.subr.bf16.mxu0 %v3143_v40  ;;  %2594 = vmatprep.subr.bf16.mxu1 %v3146_v44 }
 0x280   :  { %2564 = vmatpush1.bf16.msra.mxu0 %v3151_v51  ;;  %2596 = vmatpush1.bf16.msra.mxu1 %v3155_v53 }
 0x281   :  { %2566 = vmatprep.subr.bf16.mxu0 %v3157_v54  ;;  %2598 = vmatprep.subr.bf16.mxu1 %v3160_v58  ;;  %v756_v54 = vld [vmem:[#allocation2 + $0x2] ss:$8 sm:$0xf] }
 0x284   :  { %2568 = vmatpush1.bf16.msra.mxu0 %v3163_v1  ;;  %2600 = vmatpush1.bf16.msra.mxu1 %v3167_v2 }
 0x285   :  { %2570 = vmatprep.subr.bf16.mxu0 %v3169_v3  ;;  %2602 = vmatprep.subr.bf16.mxu1 %v3172_v7 }
 0x288   :  { %2572 = vmatpush1.bf16.msra.mxu0 %v3175_v13  ;;  %2604 = vmatpush1.bf16.msra.mxu1 %v3179_v14 }
 0x289   :  { %2574 = vmatprep.subr.bf16.mxu0 %v3181_v15  ;;  %2606 = vmatprep.subr.bf16.mxu1 %v3184_v20 }
 0x28c   :  { %2576 = vmatpush1.bf16.msra.mxu0 %v3187_v29  ;;  %2608 = vmatpush1.bf16.msra.mxu1 %v3191_v32 }
 0x28d   :  { %2578 = vmatprep.subr.bf16.mxu0 %v3193_v33  ;;  %2610 = vmatprep.subr.bf16.mxu1 %v3196_v38 }
 0x290   :  { %2580 = vmatpush1.bf16.msra.mxu0 %v3199_v47  ;;  %2612 = vmatpush1.bf16.msra.mxu1 %v3203_v48  ;;  %v1276_v48 = vld [vmem:[#allocation8 + $0x8] sm:$0xff] }
 0x291   :  { %2582 = vmatprep.subr.bf16.mxu0 %v3205_v49  ;;  %2614 = vmatprep.subr.bf16.mxu1 %v3208_v55  ;;  %v1280_v49 = vld [vmem:[#allocation8 + $0x28] sm:$0xff]  ;;  %v1278_v55 = vld [vmem:[#allocation8 + $0x18] sm:$0xff] }
 0x294   :  { %2584 = vmatpush1.bf16.msra.mxu0 %v3211_v59  ;;  %2616 = vmatpush1.bf16.msra.mxu1 %v3215_v60  ;;  %v3348_v59 = vpack.c.bf16 %v1280_v49, %v1276_v48  ;;  %v1282_v60 = vld [vmem:[#allocation8 + $0x38] sm:$0xff]  ;;  %v1316_v48 = vld [vmem:[#allocation8 + $0x148] sm:$0xff] }
 0x295   :  { %v3350_v23 = vpack.c.bf16 %v1282_v60, %v1278_v55  ;;  %v1320_v49 = vld [vmem:[#allocation8 + $0x168] sm:$0xff]  ;;  %v1318_v55 = vld [vmem:[#allocation8 + $0x158] sm:$0xff] }
 0x296   :  { %2618 = vmatprep.subr.bf16.mxu0 %v3348_v59  ;;  %v3407_v60 = vpack.c.bf16 %v1320_v49, %v1316_v48  ;;  %v3410_v27 = vpack.c.bf16 %v1322_v18, %v1318_v55 }
 0x297   :  { %2650 = vmatprep.subr.bf16.mxu1 %v3350_v23 }
 0x34a   :  { %v887_v22 = vpop.f32.mrb[6].mxu0  ;;  %v958_v26 = vpop.f32.mrb[6].mxu1 }
 0x34b   :  { %v889_v30 = vpop.f32.mrb[7].mxu0  ;;  %v960_v31 = vpop.f32.mrb[7].mxu1 }
 0x34c   :  { %v967_v35 = vcombine.low %v887_v22, %v889_v30  ;;  %v968_v39 = vcombine.low %v958_v26, %v960_v31  ;;  %v1300_v22 = vld [vmem:[#allocation8 + $0xc8] sm:$0xff]  ;;  %v1302_v30 = vld [vmem:[#allocation8 + $0xd8] sm:$0xff] }
 0x34d   :  { %v1304_v26 = vld [vmem:[#allocation8 + $0xe8] sm:$0xff] }
 0x34e   :  { %v975_v40 = vrot.slane %v967_v35, %v3262_v41  ;;  %v982_v44 = vrot.slane %v968_v39, %v3262_v41  ;;  %v3384_v31 = vpack.c.bf16 %v1304_v26, %v1300_v22  ;;  %v1306_v35 = vld [vmem:[#allocation8 + $0xf8] sm:$0xff]  ;;  %v1299_v39 = vld [vmem:[#allocation8 + $0xc0] sm:$0xff]  ;;  %v1336_v22 = vld [vmem:[#allocation8 + $0x1e8] sm:$0xff] }
 0x350   :  { %v983_v51 = vcombine.low %v975_v40, %v982_v44  ;;  %v1303_v40 = vld [vmem:[#allocation8 + $0xe0] sm:$0xff]  ;;  %v3386_v44 = vpack.c.bf16 %v1306_v35, %v1302_v30  ;;  %v3429_v30 = vpack.c.bf16 %v1336_v22, %v1332_v12  ;;  %v1334_v35 = vld [vmem:[#allocation8 + $0x1d8] sm:$0xff] }
 0x352   :  { %v990_v53 = vrot.slane %v983_v51, %v3262_v41  ;;  %v3388_v51 = vpack.c.bf16 %v1303_v40, %v1299_v39  ;;  %v1338_v39 = vld [vmem:[#allocation8 + $0x1f8] sm:$0xff]  ;;  %v1331_v40 = vld [vmem:[#allocation8 + $0x1c0] sm:$0xff] }
 0x354   :  { %v992_v58 = vadd.f32 %v990_v53, %v756_v54  ;;  %v1301_v53 = vld [vmem:[#allocation8 + $0xd0] sm:$0xff] }
 0x355   :  { %v1305_v54 = vld [vmem:[#allocation8 + $0xf0] sm:$0xff] }
 0x356   :  { %v2347_v1 = vmul.f32 -1.442695, %v992_v58 }
 0x358   :  { %2897 = vpow2.f32 %v2347_v1  ;;  %v1308_v1 = vld [vmem:[#allocation8 + $0x108] sm:$0xff] }
 0x359   :  { %2899 = vtanh.f32 %v992_v58  ;;  %v3391_v58 = vpack.c.bf16 %v1305_v54, %v1301_v53  ;;  %v3432_v53 = vpack.c.bf16 %v1338_v39, %v1334_v35  ;;  %v1335_v54 = vld [vmem:[#allocation8 + $0x1e0] sm:$0xff] }
 0x362   :  { %v2898_v2 = vpop.eup %2897 }
 0x363   :  { %v996_v3 = vadd.f32 1.0, %v2898_v2  ;;  %v2900_v7 = vpop.eup %2899  ;;  %v1312_v2 = vld [vmem:[#allocation8 + $0x128] sm:$0xff] }
 0x364   :  { %v1005_v15 = vrot.slane %v2900_v7, 2  ;;  %v3396_v7 = vpack.c.bf16 %v1312_v2, %v1308_v1  ;;  %v1333_v1 = vld [vmem:[#allocation8 + $0x1d0] sm:$0xff] }
 0x365   :  { %2901 = vrcp.f32 %v996_v3  ;;  %v1310_v3 = vld [vmem:[#allocation8 + $0x118] sm:$0xff]  ;;  %v1337_v2 = vld [vmem:[#allocation8 + $0x1f0] sm:$0xff] }
 0x36f   :  { %v2902_v13 = vpop.eup %2901 }
 0x370   :  { %v1001_v14 = vrot.slane %v2902_v13, 1  ;;  %v1007_v29 = vmul.f32 %v2902_v13, %v1005_v15  ;;  %v1010_v33 = vrot.slane %v2902_v13, 3  ;;  %v1314_v13 = vld [vmem:[#allocation8 + $0x138] sm:$0xff]  ;;  %v1311_v15 = vld [vmem:[#allocation8 + $0x120] sm:$0xff] }
 0x372   :  { %v1003_v20 = vmul.f32 %v1001_v14, %v749_v10  ;;  %v3376_v10 = vpack.c.bf16 %v1295_v9, %v1291_v8  ;;  %v1307_v14 = vld [vmem:[#allocation8 + $0x100] sm:$0xff]  ;;  %v1325_v8 = vld [vmem:[#allocation8 + $0x190] sm:$0xff]  ;;  %v3423_v9 = vpack.c.bf16 %v1327_v6, %v1323_v21 }
 0x373   :  { %v3427_v26 = vpack.c.bf16 %v1329_v11, %v1325_v8 }
 0x374   :  { %v3343_v32 = vadd.f32 %v1007_v29, %v1003_v20  ;;  %v3398_v20 = vpack.c.bf16 %v1314_v13, %v1310_v3  ;;  %v3400_v29 = vpack.c.bf16 %v1311_v15, %v1307_v14  ;;  %v3435_v3 = vpack.c.bf16 %v1335_v54, %v1331_v40 }
 0x375   :  { %v3439_v13 = vpack.c.bf16 %v1337_v2, %v1333_v1 }
 0x376   :  { %2903 = vtanh.f32 %v3343_v32 }
 0x380   :  { %v2904_v38 = vpop.eup %2903 }
 0x381   :  { %v1012_v47 = vmul.f32 %v2904_v38, %v1010_v33  ;;  %v1309_v33 = vld [vmem:[#allocation8 + $0x110] sm:$0xff] }
 0x382   :  { %v1313_v38 = vld [vmem:[#allocation8 + $0x130] sm:$0xff] }
 0x383   :  { %1013 = vst [vmem:[#allocation9 + $0x2] sm:$0x1] %v1012_v47  ;;  %1145 = vmatmul.mubr.f32.vlgmr.msra.gmra.mrb[8].mxu0 %v1012_v47  ;;  %1216 = vmatmul.mubr.f32.vlgmr.msra.gmra.mrb[8].mxu1 %v1012_v47  ;;  %v3403_v47 = vpack.c.bf16 %v1313_v38, %v1309_v33 }
 0x384   :  { %1403 = vmatprep.mubr.f32.mxu0 %v3048_v0  ;;  %1474 = vmatprep.mubr.f32.mxu1 %v3048_v0 }
 0x385   :  { %2620 = vmatpush1.bf16.msra.mxu0 %v3352_v24  ;;  %2652 = vmatpush1.bf16.msra.mxu1 %v3355_v28 }
 0x386   :  { %2622 = vmatprep.subr.bf16.mxu0 %v3360_v42  ;;  %2654 = vmatprep.subr.bf16.mxu1 %v3362_v50 }
 0x389   :  { %2624 = vmatpush1.bf16.msra.mxu0 %v3364_v52  ;;  %2656 = vmatpush1.bf16.msra.mxu1 %v3367_v63 }
 0x38a   :  { %2626 = vmatprep.subr.bf16.mxu0 %v3372_v5  ;;  %2658 = vmatprep.subr.bf16.mxu1 %v3374_v62 }
 0x38d   :  { %2628 = vmatpush1.bf16.msra.mxu0 %v3376_v10  ;;  %2660 = vmatpush1.bf16.msra.mxu1 %v3379_v16 }
 0x38e   :  { %2630 = vmatprep.subr.bf16.mxu0 %v3384_v31  ;;  %2662 = vmatprep.subr.bf16.mxu1 %v3386_v44 }
 0x391   :  { %2632 = vmatpush1.bf16.msra.mxu0 %v3388_v51  ;;  %2664 = vmatpush1.bf16.msra.mxu1 %v3391_v58 }
 0x392   :  { %2634 = vmatprep.subr.bf16.mxu0 %v3396_v7  ;;  %2666 = vmatprep.subr.bf16.mxu1 %v3398_v20 }
 0x395   :  { %2636 = vmatpush1.bf16.msra.mxu0 %v3400_v29  ;;  %2668 = vmatpush1.bf16.msra.mxu1 %v3403_v47 }
 0x396   :  { %2638 = vmatprep.subr.bf16.mxu0 %v3407_v60  ;;  %2670 = vmatprep.subr.bf16.mxu1 %v3410_v27 }
 0x399   :  { %2640 = vmatpush1.bf16.msra.mxu0 %v3412_v34  ;;  %2672 = vmatpush1.bf16.msra.mxu1 %v3415_v45 }
 0x39a   :  { %2642 = vmatprep.subr.bf16.mxu0 %v3418_v17  ;;  %2674 = vmatprep.subr.bf16.mxu1 %v3420_v4 }
 0x39d   :  { %2644 = vmatpush1.bf16.msra.mxu0 %v3423_v9  ;;  %2676 = vmatpush1.bf16.msra.mxu1 %v3427_v26 }
 0x39e   :  { %2646 = vmatprep.subr.bf16.mxu0 %v3429_v30  ;;  %2678 = vmatprep.subr.bf16.mxu1 %v3432_v53 }
 0x3a1   :  { %2648 = vmatpush1.bf16.msra.mxu0 %v3435_v3  ;;  %2680 = vmatpush1.bf16.msra.mxu1 %v3439_v13 }
 0x3a2   :  { %2682 = vmatprep.subr.bf16.mxu0 %v3348_v59  ;;  %2714 = vmatprep.subr.bf16.mxu1 %v3350_v23 }
 0x456   :  { %v1146_v14 = vpop.f32.mrb[8].mxu0  ;;  %v1217_v15 = vpop.f32.mrb[8].mxu1 }
 0x457   :  { %v1148_v33 = vpop.f32.mrb[9].mxu0  ;;  %v1219_v38 = vpop.f32.mrb[9].mxu1 }
 0x458   :  { %v1226_v48 = vcombine.low %v1146_v14, %v1148_v33  ;;  %v1227_v49 = vcombine.low %v1217_v15, %v1219_v38 }
 0x45a   :  { %v1234_v55 = vrot.slane %v1226_v48, %v3262_v41  ;;  %v1241_v18 = vrot.slane %v1227_v49, %v3262_v41 }
 0x45c   :  { %v1242_v19 = vcombine.low %v1234_v55, %v1241_v18  ;;  %v1274_v55 = vld [vmem:[#allocation2 + $0x4] ss:$8 sm:$0xf] }
 0x45e   :  { %v1249_v25 = vrot.slane %v1242_v19, %v3262_v41 }
 0x460   :  { %v1251_v37 = vadd.f32 %v1249_v25, %v1015_v36 }
 0x462   :  { %v2348_v43 = vmul.f32 -1.442695, %v1251_v37 }
 0x464   :  { %2905 = vpow2.f32 %v2348_v43 }
 0x465   :  { %2907 = vtanh.f32 %v1251_v37 }
 0x46e   :  { %v2906_v46 = vpop.eup %2905 }
 0x46f   :  { %v1255_v56 = vadd.f32 1.0, %v2906_v46  ;;  %v2908_v57 = vpop.eup %2907 }
 0x470   :  { %v1264_v8 = vrot.slane %v2908_v57, 2 }
 0x471   :  { %2909 = vrcp.f32 %v1255_v56 }
 0x47b   :  { %v2910_v21 = vpop.eup %2909 }
 0x47c   :  { %v1260_v6 = vrot.slane %v2910_v21, 1  ;;  %v1266_v12 = vmul.f32 %v2910_v21, %v1264_v8  ;;  %v1269_v35 = vrot.slane %v2910_v21, 3 }
 0x47e   :  { %v1262_v11 = vmul.f32 %v1260_v6, %v3343_v32 }
 0x480   :  { %v3450_v22 = vadd.f32 %v1266_v12, %v1262_v11 }
 0x482   :  { %2911 = vtanh.f32 %v3450_v22 }
 0x48c   :  { %v2912_v39 = vpop.eup %2911 }
 0x48d   :  { %v1271_v40 = vmul.f32 %v2912_v39, %v1269_v35 }
 0x48f   :  { %1272 = vst [vmem:[#allocation9 + $0x3] sm:$0x1] %v1271_v40  ;;  %1404 = vmatmul.mubr.f32.vlgmr.msra.gmra.mrb[10].mxu0 %v1271_v40  ;;  %1475 = vmatmul.mubr.f32.vlgmr.msra.gmra.mrb[10].mxu1 %v1271_v40 }
 0x490   :  { %2684 = vmatpush1.bf16.msra.mxu0 %v3352_v24  ;;  %2716 = vmatpush1.bf16.msra.mxu1 %v3355_v28 }
 0x491   :  { %2686 = vmatprep.subr.bf16.mxu0 %v3360_v42  ;;  %2718 = vmatprep.subr.bf16.mxu1 %v3362_v50 }
 0x492   :  { %1662 = vmatprep.mubr.f32.mxu0 %v3048_v0  ;;  %1733 = vmatprep.mubr.f32.mxu1 %v3048_v0 }
 0x494   :  { %2688 = vmatpush1.bf16.msra.mxu0 %v3364_v52  ;;  %2720 = vmatpush1.bf16.msra.mxu1 %v3367_v63 }
 0x495   :  { %2690 = vmatprep.subr.bf16.mxu0 %v3372_v5  ;;  %2722 = vmatprep.subr.bf16.mxu1 %v3374_v62 }
 0x498   :  { %2692 = vmatpush1.bf16.msra.mxu0 %v3376_v10  ;;  %2724 = vmatpush1.bf16.msra.mxu1 %v3379_v16 }
 0x499   :  { %2694 = vmatprep.subr.bf16.mxu0 %v3384_v31  ;;  %2726 = vmatprep.subr.bf16.mxu1 %v3386_v44 }
 0x49c   :  { %2696 = vmatpush1.bf16.msra.mxu0 %v3388_v51  ;;  %2728 = vmatpush1.bf16.msra.mxu1 %v3391_v58 }
 0x49d   :  { %2698 = vmatprep.subr.bf16.mxu0 %v3396_v7  ;;  %2730 = vmatprep.subr.bf16.mxu1 %v3398_v20 }
 0x4a0   :  { %2700 = vmatpush1.bf16.msra.mxu0 %v3400_v29  ;;  %2732 = vmatpush1.bf16.msra.mxu1 %v3403_v47 }
 0x4a1   :  { %2702 = vmatprep.subr.bf16.mxu0 %v3407_v60  ;;  %2734 = vmatprep.subr.bf16.mxu1 %v3410_v27 }
 0x4a4   :  { %2704 = vmatpush1.bf16.msra.mxu0 %v3412_v34  ;;  %2736 = vmatpush1.bf16.msra.mxu1 %v3415_v45 }
 0x4a5   :  { %2706 = vmatprep.subr.bf16.mxu0 %v3418_v17  ;;  %2738 = vmatprep.subr.bf16.mxu1 %v3420_v4 }
 0x4a8   :  { %2708 = vmatpush1.bf16.msra.mxu0 %v3423_v9  ;;  %2740 = vmatpush1.bf16.msra.mxu1 %v3427_v26 }
 0x4a9   :  { %2710 = vmatprep.subr.bf16.mxu0 %v3429_v30  ;;  %2742 = vmatprep.subr.bf16.mxu1 %v3432_v53 }
 0x4ac   :  { %2712 = vmatpush1.bf16.msra.mxu0 %v3435_v3  ;;  %2744 = vmatpush1.bf16.msra.mxu1 %v3439_v13 }
 0x4ad   :  { %2746 = vmatprep.subr.bf16.mxu0 %v3348_v59  ;;  %2778 = vmatprep.subr.bf16.mxu1 %v3350_v23 }
 0x562   :  { %v1405_v32 = vpop.f32.mrb[10].mxu0  ;;  %v1476_v54 = vpop.f32.mrb[10].mxu1 }
 0x563   :  { %v1407_v1 = vpop.f32.mrb[11].mxu0  ;;  %v1478_v2 = vpop.f32.mrb[11].mxu1 }
 0x564   :  { %v1485_v14 = vcombine.low %v1405_v32, %v1407_v1  ;;  %v1486_v15 = vcombine.low %v1476_v54, %v1478_v2 }
 0x566   :  { %v1493_v33 = vrot.slane %v1485_v14, %v3262_v41  ;;  %v1500_v38 = vrot.slane %v1486_v15, %v3262_v41 }
 0x568   :  { %v1501_v48 = vcombine.low %v1493_v33, %v1500_v38  ;;  %v1533_v33 = vld [vmem:[#allocation2 + $0x5] ss:$8 sm:$0xf] }
 0x56a   :  { %v1508_v49 = vrot.slane %v1501_v48, %v3262_v41 }
 0x56c   :  { %v1510_v18 = vadd.f32 %v1508_v49, %v1274_v55 }
 0x56e   :  { %v2349_v19 = vmul.f32 -1.442695, %v1510_v18 }
 0x570   :  { %2913 = vpow2.f32 %v2349_v19 }
 0x571   :  { %2915 = vtanh.f32 %v1510_v18 }
 0x57a   :  { %v2914_v25 = vpop.eup %2913 }
 0x57b   :  { %v1514_v36 = vadd.f32 1.0, %v2914_v25  ;;  %v2916_v37 = vpop.eup %2915 }
 0x57c   :  { %v1523_v56 = vrot.slane %v2916_v37, 2 }
 0x57d   :  { %2917 = vrcp.f32 %v1514_v36 }
 0x587   :  { %v2918_v43 = vpop.eup %2917 }
 0x588   :  { %v1519_v46 = vrot.slane %v2918_v43, 1  ;;  %v1525_v21 = vmul.f32 %v2918_v43, %v1523_v56  ;;  %v1528_v8 = vrot.slane %v2918_v43, 3 }
 0x58a   :  { %v1521_v57 = vmul.f32 %v1519_v46, %v3450_v22 }
 0x58c   :  { %v3491_v6 = vadd.f32 %v1525_v21, %v1521_v57 }
 0x58e   :  { %2919 = vtanh.f32 %v3491_v6 }
 0x598   :  { %v2920_v11 = vpop.eup %2919 }
 0x599   :  { %v1530_v12 = vmul.f32 %v2920_v11, %v1528_v8  ;;  %v2051_v11 = vld [vmem:[#allocation2 + $0x7] ss:$8 sm:$0xf] }
 0x59b   :  { %1531 = vst [vmem:[#allocation9 + $0x4] sm:$0x1] %v1530_v12  ;;  %1663 = vmatmul.mubr.f32.vlgmr.msra.gmra.mrb[12].mxu0 %v1530_v12  ;;  %1734 = vmatmul.mubr.f32.vlgmr.msra.gmra.mrb[12].mxu1 %v1530_v12 }
 0x59c   :  { %2748 = vmatpush1.bf16.msra.mxu0 %v3352_v24  ;;  %2780 = vmatpush1.bf16.msra.mxu1 %v3355_v28 }
 0x59d   :  { %2750 = vmatprep.subr.bf16.mxu0 %v3360_v42  ;;  %2782 = vmatprep.subr.bf16.mxu1 %v3362_v50 }
 0x59e   :  { %1921 = vmatprep.mubr.f32.mxu0 %v3048_v0  ;;  %1992 = vmatprep.mubr.f32.mxu1 %v3048_v0 }
 0x5a0   :  { %2752 = vmatpush1.bf16.msra.mxu0 %v3364_v52  ;;  %2784 = vmatpush1.bf16.msra.mxu1 %v3367_v63 }
 0x5a1   :  { %2754 = vmatprep.subr.bf16.mxu0 %v3372_v5  ;;  %2786 = vmatprep.subr.bf16.mxu1 %v3374_v62 }
 0x5a4   :  { %2756 = vmatpush1.bf16.msra.mxu0 %v3376_v10  ;;  %2788 = vmatpush1.bf16.msra.mxu1 %v3379_v16 }
 0x5a5   :  { %2758 = vmatprep.subr.bf16.mxu0 %v3384_v31  ;;  %2790 = vmatprep.subr.bf16.mxu1 %v3386_v44 }
 0x5a8   :  { %2760 = vmatpush1.bf16.msra.mxu0 %v3388_v51  ;;  %2792 = vmatpush1.bf16.msra.mxu1 %v3391_v58 }
 0x5a9   :  { %2762 = vmatprep.subr.bf16.mxu0 %v3396_v7  ;;  %2794 = vmatprep.subr.bf16.mxu1 %v3398_v20 }
 0x5ac   :  { %2764 = vmatpush1.bf16.msra.mxu0 %v3400_v29  ;;  %2796 = vmatpush1.bf16.msra.mxu1 %v3403_v47 }
 0x5ad   :  { %2766 = vmatprep.subr.bf16.mxu0 %v3407_v60  ;;  %2798 = vmatprep.subr.bf16.mxu1 %v3410_v27 }
 0x5b0   :  { %2768 = vmatpush1.bf16.msra.mxu0 %v3412_v34  ;;  %2800 = vmatpush1.bf16.msra.mxu1 %v3415_v45 }
 0x5b1   :  { %2770 = vmatprep.subr.bf16.mxu0 %v3418_v17  ;;  %2802 = vmatprep.subr.bf16.mxu1 %v3420_v4 }
 0x5b4   :  { %2772 = vmatpush1.bf16.msra.mxu0 %v3423_v9  ;;  %2804 = vmatpush1.bf16.msra.mxu1 %v3427_v26 }
 0x5b5   :  { %2774 = vmatprep.subr.bf16.mxu0 %v3429_v30  ;;  %2806 = vmatprep.subr.bf16.mxu1 %v3432_v53 }
 0x5b8   :  { %2776 = vmatpush1.bf16.msra.mxu0 %v3435_v3  ;;  %2808 = vmatpush1.bf16.msra.mxu1 %v3439_v13 }
 0x5b9   :  { %2810 = vmatprep.subr.bf16.mxu0 %v3348_v59  ;;  %2842 = vmatprep.subr.bf16.mxu1 %v3350_v23 }
 0x66e   :  { %v1664_v22 = vpop.f32.mrb[12].mxu0  ;;  %v1735_v35 = vpop.f32.mrb[12].mxu1 }
 0x66f   :  { %v1666_v39 = vpop.f32.mrb[13].mxu0  ;;  %v1737_v40 = vpop.f32.mrb[13].mxu1 }
 0x670   :  { %v1744_v32 = vcombine.low %v1664_v22, %v1666_v39  ;;  %v1745_v54 = vcombine.low %v1735_v35, %v1737_v40 }
 0x672   :  { %v1752_v1 = vrot.slane %v1744_v32, %v3262_v41  ;;  %v1759_v2 = vrot.slane %v1745_v54, %v3262_v41 }
 0x674   :  { %v1760_v14 = vcombine.low %v1752_v1, %v1759_v2 }
 0x676   :  { %v1767_v15 = vrot.slane %v1760_v14, %v3262_v41 }
 0x678   :  { %v1769_v38 = vadd.f32 %v1767_v15, %v1533_v33 }
 0x67a   :  { %v2350_v48 = vmul.f32 -1.442695, %v1769_v38 }
 0x67c   :  { %2921 = vpow2.f32 %v2350_v48 }
 0x67d   :  { %2923 = vtanh.f32 %v1769_v38 }
 0x686   :  { %v2922_v59 = vpop.eup %2921 }
 0x687   :  { %v1773_v49 = vadd.f32 1.0, %v2922_v59  ;;  %v2924_v23 = vpop.eup %2923 }
 0x688   :  { %v1782_v19 = vrot.slane %v2924_v23, 2 }
 0x689   :  { %2925 = vrcp.f32 %v1773_v49 }
 0x693   :  { %v2926_v55 = vpop.eup %2925 }
 0x694   :  { %v1778_v18 = vrot.slane %v2926_v55, 1  ;;  %v1784_v36 = vmul.f32 %v2926_v55, %v1782_v19  ;;  %v1787_v43 = vrot.slane %v2926_v55, 3 }
 0x696   :  { %v1780_v25 = vmul.f32 %v1778_v18, %v3491_v6 }
 0x698   :  { %v1785_v37 = vadd.f32 %v1784_v36, %v1780_v25 }
 0x69a   :  { %2927 = vtanh.f32 %v1785_v37 }
 0x6a4   :  { %v2928_v46 = vpop.eup %2927 }
 0x6a5   :  { %v1789_v56 = vmul.f32 %v2928_v46, %v1787_v43 }
 0x6a7   :  { %1790 = vst [vmem:[#allocation9 + $0x5] sm:$0x1] %v1789_v56  ;;  %1922 = vmatmul.mubr.f32.vlgmr.msra.gmra.mrb[14].mxu0 %v1789_v56  ;;  %1993 = vmatmul.mubr.f32.vlgmr.msra.gmra.mrb[14].mxu1 %v1789_v56 }
 0x6a8   :  { %2812 = vmatpush1.bf16.msra.mxu0 %v3352_v24  ;;  %2844 = vmatpush1.bf16.msra.mxu1 %v3355_v28 }
 0x6a9   :  { %2814 = vmatprep.subr.bf16.mxu0 %v3360_v42  ;;  %2846 = vmatprep.subr.bf16.mxu1 %v3362_v50 }
 0x6aa   :  { %2180 = vmatprep.mubr.f32.mxu0 %v3048_v0  ;;  %2251 = vmatprep.mubr.f32.mxu1 %v3048_v0 }
 0x6ac   :  { %2816 = vmatpush1.bf16.msra.mxu0 %v3364_v52  ;;  %2848 = vmatpush1.bf16.msra.mxu1 %v3367_v63 }
 0x6ad   :  { %2818 = vmatprep.subr.bf16.mxu0 %v3372_v5  ;;  %2850 = vmatprep.subr.bf16.mxu1 %v3374_v62 }
 0x6b0   :  { %2820 = vmatpush1.bf16.msra.mxu0 %v3376_v10  ;;  %2852 = vmatpush1.bf16.msra.mxu1 %v3379_v16  ;;  %v1792_v16 = vld [vmem:[#allocation2 + $0x6] ss:$8 sm:$0xf] }
 0x6b1   :  { %2822 = vmatprep.subr.bf16.mxu0 %v3384_v31  ;;  %2854 = vmatprep.subr.bf16.mxu1 %v3386_v44 }
 0x6b4   :  { %2824 = vmatpush1.bf16.msra.mxu0 %v3388_v51  ;;  %2856 = vmatpush1.bf16.msra.mxu1 %v3391_v58 }
 0x6b5   :  { %2826 = vmatprep.subr.bf16.mxu0 %v3396_v7  ;;  %2858 = vmatprep.subr.bf16.mxu1 %v3398_v20 }
 0x6b8   :  { %2828 = vmatpush1.bf16.msra.mxu0 %v3400_v29  ;;  %2860 = vmatpush1.bf16.msra.mxu1 %v3403_v47 }
 0x6b9   :  { %2830 = vmatprep.subr.bf16.mxu0 %v3407_v60  ;;  %2862 = vmatprep.subr.bf16.mxu1 %v3410_v27 }
 0x6bc   :  { %2832 = vmatpush1.bf16.msra.mxu0 %v3412_v34  ;;  %2864 = vmatpush1.bf16.msra.mxu1 %v3415_v45 }
 0x6bd   :  { %2834 = vmatprep.subr.bf16.mxu0 %v3418_v17  ;;  %2866 = vmatprep.subr.bf16.mxu1 %v3420_v4 }
 0x6c0   :  { %2836 = vmatpush1.bf16.msra.mxu0 %v3423_v9  ;;  %2868 = vmatpush1.bf16.msra.mxu1 %v3427_v26 }
 0x6c1   :  { %2838 = vmatprep.subr.bf16.mxu0 %v3429_v30  ;;  %2870 = vmatprep.subr.bf16.mxu1 %v3432_v53 }
 0x6c4   :  { %2840 = vmatpush1.bf16.msra.mxu0 %v3435_v3  ;;  %2872 = vmatpush1.bf16.msra.mxu1 %v3439_v13 }
 0x77a   :  { %v1923_v0 = vpop.f32.mrb[14].mxu0  ;;  %v1994_v24 = vpop.f32.mrb[14].mxu1 }
 0x77b   :  { %v1925_v28 = vpop.f32.mrb[15].mxu0  ;;  %v1996_v42 = vpop.f32.mrb[15].mxu1 }
 0x77c   :  { %v2003_v50 = vcombine.low %v1923_v0, %v1925_v28  ;;  %v2004_v52 = vcombine.low %v1994_v24, %v1996_v42 }
 0x77e   :  { %v2011_v63 = vrot.slane %v2003_v50, %v3262_v41  ;;  %v2018_v5 = vrot.slane %v2004_v52, %v3262_v41 }
 0x780   :  { %v2019_v62 = vcombine.low %v2011_v63, %v2018_v5 }
 0x782   :  { %v2026_v10 = vrot.slane %v2019_v62, %v3262_v41 }
 0x784   :  { %v2028_v31 = vadd.f32 %v2026_v10, %v1792_v16 }
 0x786   :  { %v2351_v44 = vmul.f32 -1.442695, %v2028_v31 }
 0x788   :  { %2929 = vpow2.f32 %v2351_v44 }
 0x789   :  { %2931 = vtanh.f32 %v2028_v31 }
 0x792   :  { %v2930_v51 = vpop.eup %2929 }
 0x793   :  { %v2032_v58 = vadd.f32 1.0, %v2930_v51  ;;  %v2932_v7 = vpop.eup %2931 }
 0x794   :  { %v2041_v47 = vrot.slane %v2932_v7, 2 }
 0x795   :  { %2933 = vrcp.f32 %v2032_v58 }
 0x79f   :  { %v2934_v20 = vpop.eup %2933 }
 0x7a0   :  { %v2037_v29 = vrot.slane %v2934_v20, 1  ;;  %v2043_v27 = vmul.f32 %v2934_v20, %v2041_v47  ;;  %v2046_v45 = vrot.slane %v2934_v20, 3 }
 0x7a2   :  { %v2039_v60 = vmul.f32 %v2037_v29, %v1785_v37 }
 0x7a4   :  { %v2044_v34 = vadd.f32 %v2043_v27, %v2039_v60 }
 0x7a6   :  { %2935 = vtanh.f32 %v2044_v34 }
 0x7b0   :  { %v2936_v17 = vpop.eup %2935 }
 0x7b1   :  { %v2048_v4 = vmul.f32 %v2936_v17, %v2046_v45 }
 0x7b3   :  { %2049 = vst [vmem:[#allocation9 + $0x6] sm:$0x1] %v2048_v4  ;;  %2181 = vmatmul.mubr.f32.vlgmr.msra.gmra.mrb[16].mxu0 %v2048_v4  ;;  %2252 = vmatmul.mubr.f32.vlgmr.msra.gmra.mrb[16].mxu1 %v2048_v4 }
 0x886   :  { %v2182_v9 = vpop.f32.mrb[16].mxu0  ;;  %v2253_v26 = vpop.f32.mrb[16].mxu1 }
 0x887   :  { %v2184_v30 = vpop.f32.mrb[17].mxu0  ;;  %v2255_v53 = vpop.f32.mrb[17].mxu1 }
 0x888   :  { %v2262_v3 = vcombine.low %v2182_v9, %v2184_v30  ;;  %v2263_v13 = vcombine.low %v2253_v26, %v2255_v53 }
 0x88a   :  { %v2270_v57 = vrot.slane %v2262_v3, %v3262_v41  ;;  %v2277_v21 = vrot.slane %v2263_v13, %v3262_v41 }
 0x88c   :  { %v2278_v6 = vcombine.low %v2270_v57, %v2277_v21 }
 0x88e   :  { %v2285_v8 = vrot.slane %v2278_v6, %v3262_v41  ;;  %v2311_v41 = vand.u32 127, %v68_v61 }
 0x890   :  { %v2287_v12 = vadd.f32 %v2285_v8, %v2051_v11  ;;  %vm2312_vm1 = vcmp.lt.s32.totalorder %v2311_v41, 32 }
 0x892   :  { %v2352_v22 = vmul.f32 -1.442695, %v2287_v12 }
 0x894   :  { %2937 = vpow2.f32 %v2352_v22 }
 0x895   :  { %2939 = vtanh.f32 %v2287_v12 }
 0x89e   :  { %v2938_v35 = vpop.eup %2937 }
 0x89f   :  { %v2291_v39 = vadd.f32 1.0, %v2938_v35  ;;  %v2940_v40 = vpop.eup %2939 }
 0x8a0   :  { %v2300_v1 = vrot.slane %v2940_v40, 2 }
 0x8a1   :  { %2941 = vrcp.f32 %v2291_v39 }
 0x8ab   :  { %v2942_v32 = vpop.eup %2941 }
 0x8ac   :  { %v2296_v54 = vrot.slane %v2942_v32, 1  ;;  %v2302_v14 = vmul.f32 %v2942_v32, %v2300_v1  ;;  %v2305_v33 = vrot.slane %v2942_v32, 3 }
 0x8ae   :  { %v2298_v2 = vmul.f32 %v2296_v54, %v2044_v34 }
 0x8b0   :  { %v2303_v15 = vadd.f32 %v2302_v14, %v2298_v2 }
 0x8b2   :  { %2943 = vtanh.f32 %v2303_v15 }
 0x8bc   :  { %v2944_v38 = vpop.eup %2943 }
 0x8bd   :  { %v2307_v48 = vmul.f32 %v2944_v38, %v2305_v33 }
 0x8bf   :  { %2308 = vst [vmem:[#allocation9 + $0x7] sm:$0x1] %v2307_v48 }
 0x8c6   :  { %v2309_v59 = vld [vmem:[#allocation9] sm:$0xff] }
 0x8c7   :  { %v2313_v49 = vsel %vm2312_vm1, %v2309_v59, -inf }
 0x8c8   :  { %2314 = vmax.xlane.f32.xlu0 %v2313_v49 }
 0x955   :  { %v2315_v23 = vpop.xlane.xlu0 %2314 }
 0x956   :  { %v2316_v55 = vsub.f32 %v2309_v59, %v2315_v23 }
 0x958   :  { %v2317_v18 = vmul.f32 1.442695, %v2316_v55 }
 0x95a   :  { %2945 = vpow2.f32 %v2317_v18 }
 0x964   :  { %v2946_v19 = vpop.eup %2945 }
 0x965   :  { %v2319_v25 = vsel %vm2312_vm1, %v2946_v19, 0.0 }
 0x966   :  { %2320 = vadd.xlane.f32.xlu0 %v2319_v25 }
 0x9f3   :  { %v2321_v36 = vpop.xlane.xlu0 %2320 }
 0x9f4   :  { %2947 = vlog2.f32 %v2321_v36 }
 0x9fe   :  { %v2948_v37 = vpop.eup %2947 }
 0x9ff   :  { %v2323_v43 = vmul.f32 0.6931472, %v2948_v37 }
 0xa01   :  { %v2324_v46 = vadd.f32 %v2323_v43, %v2315_v23 }
 0xa03   :  { %v2325_v56 = vsub.f32 %v2309_v59, %v2324_v46 }
 0xa05   :  { %2326 = vst [vmem:[#allocation9] sm:$0xff] %v2325_v56 }
 0xa06   :  { %3026 = shalt.err (!%p3023_p0)
}
 0xa07   :  { %s3027_s30 = scalar_lea.hbm %s3587_s4, 128 }
 0xa08   :  { %p3028_p1 = scmp.ne.s32.totalorder %s3587_s4, %s3027_s30  ;;  %p3031_p2 = scmp.lt.u32.totalorder %s3027_s30, %s3587_s4 }
 0xa0a   :  { %p3033_p3 = pnand %p3031_p2, %p3028_p1 }
 0xa0c   :  { %3036 = shalt.err (!%p3033_p3)
}
 0xa0d   :  { %2336 = dma.vmem_to_hbm [thread:$0]  %s2334_s26, 128, %s3587_s4, [#allocation5]  }
 0xa0e   :  { %3041 = dma.done.wait [#allocation5], 128  }
 0xa0f   :  { %3042 = vsyncadd [#allocation5], 4294967168 }
 0xa10   :  { %2340 = vsyncpa [#allocation4], 1 }
 0xa11   :  { %2341 = vsyncpa [#allocation7], 1 }
 0xa12   :  { %2342 = vsyncpa [#allocation5], 1 }

</bundles_post_ra>
